<compile_context>
chip_gen: v7x
topology: tpu7x:2x2x1
jax: 0.10.0
libtpu: 0.0.40
codegen_flags: <defaults>
</compile_context>

<pallas_src>
import functools

import jax
import jax.numpy as jnp
import numpy as np
from jax import lax
from jax.experimental import pallas as pl
from jax.experimental.pallas import tpu as pltpu


def _round_up(x, m):
    return (x + m - 1) // m * m


# ---------------------------------------------------------------------------
# Stage 1: input projection  gx = ReLU(x @ W_lin + b_lin) @ W_ih^T + b   (parallel grid)
# ---------------------------------------------------------------------------
def _input_projection_kernel(x_ref, w_lin_ref, b_lin_ref, w_ih_ref, b_lstm_ref, gx_ref):
    x = x_ref[...]                                                       # (TM, in)
    xl = jnp.dot(x, w_lin_ref[...], preferred_element_type=jnp.float32)  # f32 accumulate
    xl = jnp.maximum(xl + b_lin_ref[...], 0.0)                           # Linear + ReLU
    xl = xl.astype(w_ih_ref.dtype)                                       # bf16 operands if enabled
    gx = jnp.dot(xl, w_ih_ref[...], preferred_element_type=jnp.float32)
    gx_ref[...] = gx + b_lstm_ref[...]                                   # fold b_ih + b_hh here


# ---------------------------------------------------------------------------
# Stage 2: LSTM recurrence over time chunks (sequential grid, h/c carried in VMEM scratch)
# ---------------------------------------------------------------------------
def _lstm_recurrence_kernel(gx_ref, w_hh_ref, hc_ref, h_sc, c_sc, *, u_pad, tc):
    step = pl.program_id(0)

    @pl.when(step == 0)
    def _():
        h_sc[...] = jnp.zeros_like(h_sc)
        c_sc[...] = jnp.zeros_like(c_sc)
        hc_ref[...] = jnp.zeros_like(hc_ref)   # safe init of the resident output block

    # Loop-invariant loads hoisted out of the unrolled inner time loop.
    w_hh = w_hh_ref[...]                       # (U_pad, 4*U_pad), possibly bf16
    h = h_sc[...]                              # (B_pad, U_pad) f32 carry
    c = c_sc[...]

    # Static, fully-unrolled inner loop over the Tc timesteps of this chunk
    # (constant indices, LLO scheduler sees the whole chunk).
    for tt in range(tc):
        g_t = gx_ref[tt]                       # (B_pad, 4*U_pad) f32, precomputed x-part
        gates = g_t + jnp.dot(h.astype(w_hh.dtype), w_hh,
                              preferred_element_type=jnp.float32)
        # 128-aligned gate slices (U_pad is a multiple of 128): pure VPU/EUP work.
        i_g = jax.nn.sigmoid(gates[:, 0 * u_pad:1 * u_pad])
        f_g = jax.nn.sigmoid(gates[:, 1 * u_pad:2 * u_pad])
        g_g = jnp.tanh(gates[:, 2 * u_pad:3 * u_pad])
        o_g = jax.nn.sigmoid(gates[:, 3 * u_pad:4 * u_pad])
        c = f_g * c + i_g * g_g
        h = o_g * jnp.tanh(c)

    h_sc[...] = h
    c_sc[...] = c

    @pl.when(step == pl.num_programs(0) - 1)
    def _():
        # Single lane-dense (B_pad, 2*U_pad) output slab: [h | c].  Xv[:, -1, :] == h.
        hc_ref[:, :u_pad] = h.astype(hc_ref.dtype)
        hc_ref[:, u_pad:] = c.astype(hc_ref.dtype)


# ---------------------------------------------------------------------------
# Wrapper
# ---------------------------------------------------------------------------
@functools.partial(jax.jit, static_argnames=("use_bf16",))
def video_encoder_forward(xv, params, *, use_bf16=True):
    """xv: (B, T, in_size) float32.  Returns (Xv_last, (h, c)), each (B, units)."""
    B, T, in_size = xv.shape
    units = params["w_lin"].shape[1]

    U_pad = _round_up(units, 128)          # lane-aligned hidden size
    G = 4 * U_pad                          # gate width (each gate 128-aligned)
    B_pad = _round_up(B, 8)                # sublane-aligned batch
    Tc = next(d for d in (8, 4, 2, 1) if T % d == 0)   # time chunk per grid step
    compute_dtype = jnp.bfloat16 if use_bf16 else jnp.float32

    # ---- pad parameters: each gate k mapped to columns [k*U_pad, k*U_pad + units) ----
    w_lin_p = jnp.zeros((in_size, U_pad), jnp.float32).at[:, :units].set(params["w_lin"])
    b_lin_p = jnp.zeros((1, U_pad), jnp.float32).at[0, :units].set(params["b_lin"])

    def pad_gate_weight(w):                # (units, 4*units) -> (U_pad, G)
        out = jnp.zeros((U_pad, G), jnp.float32)
        for k in range(4):
            out = out.at[:units, k * U_pad:k * U_pad + units].set(
                w[:, k * units:(k + 1) * units])
        return out

    w_ih_p = pad_gate_weight(params["w_ih_t"])
    w_hh_p = pad_gate_weight(params["w_hh_t"])

    b_lstm = params["b_ih"] + params["b_hh"]
    b_lstm_p = jnp.zeros((1, G), jnp.float32)
    for k in range(4):
        b_lstm_p = b_lstm_p.at[0, k * U_pad:k * U_pad + units].set(
            b_lstm[k * units:(k + 1) * units])

    # bf16 matmul operands (f32 accumulation); biases stay f32 (added post-accumulation).
    w_lin_c = w_lin_p.astype(compute_dtype)
    w_ih_c = w_ih_p.astype(compute_dtype)
    w_hh_c = w_hh_p.astype(compute_dtype)

    # ---- stage 1: big parallel input-projection matmul over all timesteps ----
    # Transpose the SMALL input to time-major before projecting, so the 4*U-wide gates
    # tensor is produced time-major directly (no extra HBM pass over the big intermediate).
    x_tm = jnp.transpose(xv, (1, 0, 2))                         # (T, B, in)
    x_tm = jnp.pad(x_tm, ((0, 0), (0, B_pad - B), (0, 0)))      # (T, B_pad, in)
    M = T * B_pad
    TM = min(128, M)                                            # M is a multiple of 8
    M_pad = _round_up(M, TM)
    x_rows = x_tm.reshape(M, in_size)
    x_rows = jnp.pad(x_rows, ((0, M_pad - M), (0, 0))).astype(compute_dtype)

    full = lambda i: (0, 0)
    gx_flat = pl.pallas_call(
        _input_projection_kernel,
        out_shape=jax.ShapeDtypeStruct((M_pad, G), jnp.float32),
        grid_spec=pltpu.PrefetchScalarGridSpec(
            num_scalar_prefetch=0,
            grid=(M_pad // TM,),
            in_specs=[
                pl.BlockSpec((TM, in_size), lambda i: (i, 0)),  # x rows
                pl.BlockSpec((in_size, U_pad), full),           # W_lin
                pl.BlockSpec((1, U_pad), full),                 # b_lin
                pl.BlockSpec((U_pad, G), full),                 # W_ih^T (gate-padded)
                pl.BlockSpec((1, G), full),                     # b_ih + b_hh
            ],
            out_specs=pl.BlockSpec((TM, G), lambda i: (i, 0)),
        ),
        compiler_params=pltpu.CompilerParams(
            dimension_semantics=("parallel",)),                 # both TCs on v7x
    )(x_rows, w_lin_c, b_lin_p, w_ih_c, b_lstm_p)

    gx_tm = gx_flat[:M].reshape(T, B_pad, G)                    # time-major, free reshape

    # ---- stage 2: time-chunked sequential LSTM recurrence ----
    hc = pl.pallas_call(
        functools.partial(_lstm_recurrence_kernel, u_pad=U_pad, tc=Tc),
        out_shape=jax.ShapeDtypeStruct((B_pad, 2 * U_pad), jnp.float32),
        grid_spec=pltpu.PrefetchScalarGridSpec(
            num_scalar_prefetch=0,
            grid=(T // Tc,),
            in_specs=[
                pl.BlockSpec((Tc, B_pad, G), lambda t: (t, 0, 0)),  # gates_x chunk
                pl.BlockSpec((U_pad, G), lambda t: (0, 0)),         # W_hh^T (constant)
            ],
            out_specs=pl.BlockSpec((B_pad, 2 * U_pad), lambda t: (0, 0)),
            scratch_shapes=[
                pltpu.VMEM((B_pad, U_pad), jnp.float32),   # h carry (f32)
                pltpu.VMEM((B_pad, U_pad), jnp.float32),   # c carry (f32)
            ],
        ),
        compiler_params=pltpu.CompilerParams(
            dimension_semantics=("arbitrary",)),           # recurrence: sequential over T
    )(gx_tm, w_hh_c)

    h = hc[:B, :units]
    c = hc[:B, U_pad:U_pad + units]
    # Xv[:, -1, :] of a single-layer batch_first LSTM equals h_T -> no duplicate output DMA.
    return h, (h, c)


# ---------------------------------------------------------------------------
# Deterministic parameter init matching reset_parameters()
# ---------------------------------------------------------------------------
def _xavier_uniform(key, shape):
    fan_out, fan_in = shape                 # PyTorch weight convention (out, in)
    bound = np.sqrt(6.0 / (fan_in + fan_out))
    return jax.random.uniform(key, shape, jnp.float32, -bound, bound)


def _orthogonal(key, shape):
    rows, cols = shape
    a = jax.random.normal(key, (max(rows, cols), min(rows, cols)), jnp.float32)
    q, r = jnp.linalg.qr(a)
    q = q * jnp.sign(jnp.diag(r))[None, :]
    if rows < cols:
        q = q.T
    return q[:rows, :cols]


def init_params(key, in_size, units):
    k1, k2, k3 = jax.random.split(key, 3)
    w_linear = _xavier_uniform(k1, (units, in_size))   # nn.Linear weight (out, in)
    w_ih = _xavier_uniform(k2, (4 * units, units))     # LSTM weight_ih_l0
    w_hh = _orthogonal(k3, (4 * units, units))         # LSTM weight_hh_l0 (orthogonal)
    return {
        "w_lin": w_linear.T,                            # (in_size, units)
        "b_lin": jnp.zeros((units,), jnp.float32),
        "w_ih_t": w_ih.T,                               # (units, 4*units)
        "w_hh_t": w_hh.T,                               # (units, 4*units)
        "b_ih": jnp.zeros((4 * units,), jnp.float32),
        "b_hh": jnp.zeros((4 * units,), jnp.float32),
    }


# ---------------------------------------------------------------------------
# Pure-JAX reference (for correctness check)
# ---------------------------------------------------------------------------
def reference_forward(xv, params):
    units = params["w_lin"].shape[1]
    xl = jnp.maximum(xv @ params["w_lin"] + params["b_lin"], 0.0)   # (B, T, U)
    b = params["b_ih"] + params["b_hh"]

    def step(carry, x_t):
        h, c = carry
        gates = x_t @ params["w_ih_t"] + h @ params["w_hh_t"] + b
        i = jax.nn.sigmoid(gates[:, 0 * units:1 * units])
        f = jax.nn.sigmoid(gates[:, 1 * units:2 * units])
        g = jnp.tanh(gates[:, 2 * units:3 * units])
        o = jax.nn.sigmoid(gates[:, 3 * units:4 * units])
        c = f * c + i * g
        h = o * jnp.tanh(c)
        return (h, c), h

    B = xv.shape[0]
    h0 = jnp.zeros((B, units), jnp.float32)
    c0 = jnp.zeros((B, units), jnp.float32)
    (h, c), hs = lax.scan(step, (h0, c0), jnp.transpose(xl, (1, 0, 2)))
    return hs[-1], (h, c)


if __name__ == "__main__":
    B, T, IN_SIZE, UNITS = 2, 16, 16, 32
    key = jax.random.PRNGKey(0)
    k_param, k_x = jax.random.split(key)

    params = init_params(k_param, IN_SIZE, UNITS)
    xv = jax.random.normal(k_x, (B, T, IN_SIZE), jnp.float32)

    ref_last, (ref_h, ref_c) = reference_forward(xv, params)

    # Exact-semantics path (f32 matmul operands): tight tolerance vs. reference.
    xv_last, (h, c) = video_encoder_forward(xv, params, use_bf16=False)
    jax.block_until_ready((xv_last, h, c))
    np.testing.assert_allclose(np.asarray(xv_last), np.asarray(ref_last), rtol=1e-4, atol=1e-4)
    np.testing.assert_allclose(np.asarray(h), np.asarray(ref_h), rtol=1e-4, atol=1e-4)
    np.testing.assert_allclose(np.asarray(c), np.asarray(ref_c), rtol=1e-4, atol=1e-4)

    # bf16-MXU path (per perf review: bf16 operands, f32 accumulation) with loosened tolerance.
    xv_last_b, (h_b, c_b) = video_encoder_forward(xv, params, use_bf16=True)
    jax.block_until_ready((xv_last_b, h_b, c_b))
    np.testing.assert_allclose(np.asarray(h_b), np.asarray(ref_h), rtol=5e-2, atol=5e-2)
    np.testing.assert_allclose(np.asarray(c_b), np.asarray(ref_c), rtol=5e-2, atol=5e-2)

    print("KERNEL_OK")
</pallas_src>

<mosaic_0001>
module attributes {stable_mosaic.version = 11 : i64} {
  func.func @_lstm_recurrence_kernel(%arg0: i32, %arg1: memref<8x8x512xf32, #tpu.memory_space<vmem>>, %arg2: memref<128x512xf32, #tpu.memory_space<vmem>>, %arg3: memref<8x256xf32, #tpu.memory_space<vmem>>, %arg4: memref<8x128xf32, #tpu.memory_space<vmem>>, %arg5: memref<8x128xf32, #tpu.memory_space<vmem>>) attributes {dimension_semantics = [#tpu.dimension_semantics<arbitrary>], iteration_bounds = array<i64: 2>, scalar_prefetch = 0 : i64, scratch_operands = 2 : i64, tpu.core_type = #tpu.core_type<tc>, window_params = [{transform_indices = @transform_0, window_bounds = array<i64: 8, 8, 512>}, {pipeline_mode = #tpu.pipeline_mode<synchronous>, transform_indices = @transform_1, window_bounds = array<i64: 128, 512>}, {pipeline_mode = #tpu.pipeline_mode<synchronous>, transform_indices = @transform_2, window_bounds = array<i64: 8, 256>}]} {
    %c0_i32 = arith.constant 0 : i32
    %0 = arith.cmpi eq, %arg0, %c0_i32 : i32
    %1 = arith.extui %0 : i1 to i32
    %c0_i32_0 = arith.constant 0 : i32
    %2 = arith.cmpi ne, %1, %c0_i32_0 : i32
    scf.if %2 {
      %cst_59 = arith.constant 0.000000e+00 : f32
      %243 = vector.broadcast %cst_59 : f32 to vector<8x128xf32>
      %c0_60 = arith.constant 0 : index
      %c0_61 = arith.constant 0 : index
      %244 = vector.load %arg4[%c0_60, %c0_61] : memref<8x128xf32, #tpu.memory_space<vmem>>, vector<8x128xf32>
      tpu.vector_store %arg4[%c0_60, %c0_61], %243 {strides = array<i32>} : memref<8x128xf32, #tpu.memory_space<vmem>>, vector<8x128xf32>,
      %cst_62 = arith.constant 0.000000e+00 : f32
      %245 = vector.broadcast %cst_62 : f32 to vector<8x128xf32>
      %c0_63 = arith.constant 0 : index
      %c0_64 = arith.constant 0 : index
      %246 = vector.load %arg5[%c0_63, %c0_64] : memref<8x128xf32, #tpu.memory_space<vmem>>, vector<8x128xf32>
      tpu.vector_store %arg5[%c0_63, %c0_64], %245 {strides = array<i32>} : memref<8x128xf32, #tpu.memory_space<vmem>>, vector<8x128xf32>,
      %cst_65 = arith.constant 0.000000e+00 : f32
      %247 = vector.broadcast %cst_65 : f32 to vector<8x256xf32>
      %c0_66 = arith.constant 0 : index
      %c0_67 = arith.constant 0 : index
      %248 = vector.load %arg3[%c0_66, %c0_67] : memref<8x256xf32, #tpu.memory_space<vmem>>, vector<8x256xf32>
      tpu.vector_store %arg3[%c0_66, %c0_67], %247 {strides = array<i32>} : memref<8x256xf32, #tpu.memory_space<vmem>>, vector<8x256xf32>,
    } else {
    }
    %c0 = arith.constant 0 : index
    %c0_1 = arith.constant 0 : index
    %3 = vector.load %arg2[%c0, %c0_1] : memref<128x512xf32, #tpu.memory_space<vmem>>, vector<128x512xf32>
    %c0_2 = arith.constant 0 : index
    %c0_3 = arith.constant 0 : index
    %4 = vector.load %arg4[%c0_2, %c0_3] : memref<8x128xf32, #tpu.memory_space<vmem>>, vector<8x128xf32>
    %c0_4 = arith.constant 0 : index
    %c0_5 = arith.constant 0 : index
    %5 = vector.load %arg5[%c0_4, %c0_5] : memref<8x128xf32, #tpu.memory_space<vmem>>, vector<8x128xf32>
    %c0_6 = arith.constant 0 : index
    %c0_7 = arith.constant 0 : index
    %c0_8 = arith.constant 0 : index
    %6 = vector.load %arg1[%c0_6, %c0_7, %c0_8] : memref<8x8x512xf32, #tpu.memory_space<vmem>>, vector<1x8x512xf32>
    %7 = vector.shape_cast %6 : vector<1x8x512xf32> to vector<8x512xf32>
    %cst = arith.constant dense<0.000000e+00> : vector<8x512xf32>
    %8 = tpu.matmul %4, %3, %cst {dimension_numbers = #tpu.dot_dimension_numbers<[1], [0], [0], [1], [0, 0, 1, 1], [], []>} : vector<8x128xf32>, vector<128x512xf32>, vector<8x512xf32> -> vector<8x512xf32>
    %9 = arith.addf %7, %8 : vector<8x512xf32>
    %10 = vector.extract_strided_slice %9 {offsets = [0, 0], sizes = [8, 128], strides = [1, 1]} : vector<8x512xf32> to vector<8x128xf32>
    %11 = arith.negf %10 : vector<8x128xf32>
    %12 = math.exp %11 : vector<8x128xf32>
    %cst_9 = arith.constant 1.000000e+00 : f32
    %13 = vector.broadcast %cst_9 : f32 to vector<8x128xf32>
    %14 = arith.addf %13, %12 : vector<8x128xf32>
    %15 = arith.divf %13, %14 : vector<8x128xf32>
    %16 = vector.extract_strided_slice %9 {offsets = [0, 128], sizes = [8, 128], strides = [1, 1]} : vector<8x512xf32> to vector<8x128xf32>
    %17 = arith.negf %16 : vector<8x128xf32>
    %18 = math.exp %17 : vector<8x128xf32>
    %cst_10 = arith.constant 1.000000e+00 : f32
    %19 = vector.broadcast %cst_10 : f32 to vector<8x128xf32>
    %20 = arith.addf %19, %18 : vector<8x128xf32>
    %21 = arith.divf %19, %20 : vector<8x128xf32>
    %22 = vector.extract_strided_slice %9 {offsets = [0, 256], sizes = [8, 128], strides = [1, 1]} : vector<8x512xf32> to vector<8x128xf32>
    %23 = math.tanh %22 : vector<8x128xf32>
    %24 = vector.extract_strided_slice %9 {offsets = [0, 384], sizes = [8, 128], strides = [1, 1]} : vector<8x512xf32> to vector<8x128xf32>
    %25 = arith.negf %24 : vector<8x128xf32>
    %26 = math.exp %25 : vector<8x128xf32>
    %cst_11 = arith.constant 1.000000e+00 : f32
    %27 = vector.broadcast %cst_11 : f32 to vector<8x128xf32>
    %28 = arith.addf %27, %26 : vector<8x128xf32>
    %29 = arith.divf %27, %28 : vector<8x128xf32>
    %30 = arith.mulf %21, %5 : vector<8x128xf32>
    %31 = arith.mulf %15, %23 : vector<8x128xf32>
    %32 = arith.addf %30, %31 : vector<8x128xf32>
    %33 = math.tanh %32 : vector<8x128xf32>
    %34 = arith.mulf %29, %33 : vector<8x128xf32>
    %c1 = arith.constant 1 : index
    %c0_12 = arith.constant 0 : index
    %c0_13 = arith.constant 0 : index
    %35 = vector.load %arg1[%c1, %c0_12, %c0_13] : memref<8x8x512xf32, #tpu.memory_space<vmem>>, vector<1x8x512xf32>
    %36 = vector.shape_cast %35 : vector<1x8x512xf32> to vector<8x512xf32>
    %cst_14 = arith.constant dense<0.000000e+00> : vector<8x512xf32>
    %37 = tpu.matmul %34, %3, %cst_14 {dimension_numbers = #tpu.dot_dimension_numbers<[1], [0], [0], [1], [0, 0, 1, 1], [], []>} : vector<8x128xf32>, vector<128x512xf32>, vector<8x512xf32> -> vector<8x512xf32>
    %38 = arith.addf %36, %37 : vector<8x512xf32>
    %39 = vector.extract_strided_slice %38 {offsets = [0, 0], sizes = [8, 128], strides = [1, 1]} : vector<8x512xf32> to vector<8x128xf32>
    %40 = arith.negf %39 : vector<8x128xf32>
    %41 = math.exp %40 : vector<8x128xf32>
    %cst_15 = arith.constant 1.000000e+00 : f32
    %42 = vector.broadcast %cst_15 : f32 to vector<8x128xf32>
    %43 = arith.addf %42, %41 : vector<8x128xf32>
    %44 = arith.divf %42, %43 : vector<8x128xf32>
    %45 = vector.extract_strided_slice %38 {offsets = [0, 128], sizes = [8, 128], strides = [1, 1]} : vector<8x512xf32> to vector<8x128xf32>
    %46 = arith.negf %45 : vector<8x128xf32>
    %47 = math.exp %46 : vector<8x128xf32>
    %cst_16 = arith.constant 1.000000e+00 : f32
    %48 = vector.broadcast %cst_16 : f32 to vector<8x128xf32>
    %49 = arith.addf %48, %47 : vector<8x128xf32>
    %50 = arith.divf %48, %49 : vector<8x128xf32>
    %51 = vector.extract_strided_slice %38 {offsets = [0, 256], sizes = [8, 128], strides = [1, 1]} : vector<8x512xf32> to vector<8x128xf32>
    %52 = math.tanh %51 : vector<8x128xf32>
    %53 = vector.extract_strided_slice %38 {offsets = [0, 384], sizes = [8, 128], strides = [1, 1]} : vector<8x512xf32> to vector<8x128xf32>
    %54 = arith.negf %53 : vector<8x128xf32>
    %55 = math.exp %54 : vector<8x128xf32>
    %cst_17 = arith.constant 1.000000e+00 : f32
    %56 = vector.broadcast %cst_17 : f32 to vector<8x128xf32>
    %57 = arith.addf %56, %55 : vector<8x128xf32>
    %58 = arith.divf %56, %57 : vector<8x128xf32>
    %59 = arith.mulf %50, %32 : vector<8x128xf32>
    %60 = arith.mulf %44, %52 : vector<8x128xf32>
    %61 = arith.addf %59, %60 : vector<8x128xf32>
    %62 = math.tanh %61 : vector<8x128xf32>
    %63 = arith.mulf %58, %62 : vector<8x128xf32>
    %c2 = arith.constant 2 : index
    %c0_18 = arith.constant 0 : index
    %c0_19 = arith.constant 0 : index
    %64 = vector.load %arg1[%c2, %c0_18, %c0_19] : memref<8x8x512xf32, #tpu.memory_space<vmem>>, vector<1x8x512xf32>
    %65 = vector.shape_cast %64 : vector<1x8x512xf32> to vector<8x512xf32>
    %cst_20 = arith.constant dense<0.000000e+00> : vector<8x512xf32>
    %66 = tpu.matmul %63, %3, %cst_20 {dimension_numbers = #tpu.dot_dimension_numbers<[1], [0], [0], [1], [0, 0, 1, 1], [], []>} : vector<8x128xf32>, vector<128x512xf32>, vector<8x512xf32> -> vector<8x512xf32>
    %67 = arith.addf %65, %66 : vector<8x512xf32>
    %68 = vector.extract_strided_slice %67 {offsets = [0, 0], sizes = [8, 128], strides = [1, 1]} : vector<8x512xf32> to vector<8x128xf32>
    %69 = arith.negf %68 : vector<8x128xf32>
    %70 = math.exp %69 : vector<8x128xf32>
    %cst_21 = arith.constant 1.000000e+00 : f32
    %71 = vector.broadcast %cst_21 : f32 to vector<8x128xf32>
    %72 = arith.addf %71, %70 : vector<8x128xf32>
    %73 = arith.divf %71, %72 : vector<8x128xf32>
    %74 = vector.extract_strided_slice %67 {offsets = [0, 128], sizes = [8, 128], strides = [1, 1]} : vector<8x512xf32> to vector<8x128xf32>
    %75 = arith.negf %74 : vector<8x128xf32>
    %76 = math.exp %75 : vector<8x128xf32>
    %cst_22 = arith.constant 1.000000e+00 : f32
    %77 = vector.broadcast %cst_22 : f32 to vector<8x128xf32>
    %78 = arith.addf %77, %76 : vector<8x128xf32>
    %79 = arith.divf %77, %78 : vector<8x128xf32>
    %80 = vector.extract_strided_slice %67 {offsets = [0, 256], sizes = [8, 128], strides = [1, 1]} : vector<8x512xf32> to vector<8x128xf32>
    %81 = math.tanh %80 : vector<8x128xf32>
    %82 = vector.extract_strided_slice %67 {offsets = [0, 384], sizes = [8, 128], strides = [1, 1]} : vector<8x512xf32> to vector<8x128xf32>
    %83 = arith.negf %82 : vector<8x128xf32>
    %84 = math.exp %83 : vector<8x128xf32>
    %cst_23 = arith.constant 1.000000e+00 : f32
    %85 = vector.broadcast %cst_23 : f32 to vector<8x128xf32>
    %86 = arith.addf %85, %84 : vector<8x128xf32>
    %87 = arith.divf %85, %86 : vector<8x128xf32>
    %88 = arith.mulf %79, %61 : vector<8x128xf32>
    %89 = arith.mulf %73, %81 : vector<8x128xf32>
    %90 = arith.addf %88, %89 : vector<8x128xf32>
    %91 = math.tanh %90 : vector<8x128xf32>
    %92 = arith.mulf %87, %91 : vector<8x128xf32>
    %c3 = arith.constant 3 : index
    %c0_24 = arith.constant 0 : index
    %c0_25 = arith.constant 0 : index
    %93 = vector.load %arg1[%c3, %c0_24, %c0_25] : memref<8x8x512xf32, #tpu.memory_space<vmem>>, vector<1x8x512xf32>
    %94 = vector.shape_cast %93 : vector<1x8x512xf32> to vector<8x512xf32>
    %cst_26 = arith.constant dense<0.000000e+00> : vector<8x512xf32>
    %95 = tpu.matmul %92, %3, %cst_26 {dimension_numbers = #tpu.dot_dimension_numbers<[1], [0], [0], [1], [0, 0, 1, 1], [], []>} : vector<8x128xf32>, vector<128x512xf32>, vector<8x512xf32> -> vector<8x512xf32>
    %96 = arith.addf %94, %95 : vector<8x512xf32>
    %97 = vector.extract_strided_slice %96 {offsets = [0, 0], sizes = [8, 128], strides = [1, 1]} : vector<8x512xf32> to vector<8x128xf32>
    %98 = arith.negf %97 : vector<8x128xf32>
    %99 = math.exp %98 : vector<8x128xf32>
    %cst_27 = arith.constant 1.000000e+00 : f32
    %100 = vector.broadcast %cst_27 : f32 to vector<8x128xf32>
    %101 = arith.addf %100, %99 : vector<8x128xf32>
    %102 = arith.divf %100, %101 : vector<8x128xf32>
    %103 = vector.extract_strided_slice %96 {offsets = [0, 128], sizes = [8, 128], strides = [1, 1]} : vector<8x512xf32> to vector<8x128xf32>
    %104 = arith.negf %103 : vector<8x128xf32>
    %105 = math.exp %104 : vector<8x128xf32>
    %cst_28 = arith.constant 1.000000e+00 : f32
    %106 = vector.broadcast %cst_28 : f32 to vector<8x128xf32>
    %107 = arith.addf %106, %105 : vector<8x128xf32>
    %108 = arith.divf %106, %107 : vector<8x128xf32>
    %109 = vector.extract_strided_slice %96 {offsets = [0, 256], sizes = [8, 128], strides = [1, 1]} : vector<8x512xf32> to vector<8x128xf32>
    %110 = math.tanh %109 : vector<8x128xf32>
    %111 = vector.extract_strided_slice %96 {offsets = [0, 384], sizes = [8, 128], strides = [1, 1]} : vector<8x512xf32> to vector<8x128xf32>
    %112 = arith.negf %111 : vector<8x128xf32>
    %113 = math.exp %112 : vector<8x128xf32>
    %cst_29 = arith.constant 1.000000e+00 : f32
    %114 = vector.broadcast %cst_29 : f32 to vector<8x128xf32>
    %115 = arith.addf %114, %113 : vector<8x128xf32>
    %116 = arith.divf %114, %115 : vector<8x128xf32>
    %117 = arith.mulf %108, %90 : vector<8x128xf32>
    %118 = arith.mulf %102, %110 : vector<8x128xf32>
    %119 = arith.addf %117, %118 : vector<8x128xf32>
    %120 = math.tanh %119 : vector<8x128xf32>
    %121 = arith.mulf %116, %120 : vector<8x128xf32>
    %c4 = arith.constant 4 : index
    %c0_30 = arith.constant 0 : index
    %c0_31 = arith.constant 0 : index
    %122 = vector.load %arg1[%c4, %c0_30, %c0_31] : memref<8x8x512xf32, #tpu.memory_space<vmem>>, vector<1x8x512xf32>
    %123 = vector.shape_cast %122 : vector<1x8x512xf32> to vector<8x512xf32>
    %cst_32 = arith.constant dense<0.000000e+00> : vector<8x512xf32>
    %124 = tpu.matmul %121, %3, %cst_32 {dimension_numbers = #tpu.dot_dimension_numbers<[1], [0], [0], [1], [0, 0, 1, 1], [], []>} : vector<8x128xf32>, vector<128x512xf32>, vector<8x512xf32> -> vector<8x512xf32>
    %125 = arith.addf %123, %124 : vector<8x512xf32>
    %126 = vector.extract_strided_slice %125 {offsets = [0, 0], sizes = [8, 128], strides = [1, 1]} : vector<8x512xf32> to vector<8x128xf32>
    %127 = arith.negf %126 : vector<8x128xf32>
    %128 = math.exp %127 : vector<8x128xf32>
    %cst_33 = arith.constant 1.000000e+00 : f32
    %129 = vector.broadcast %cst_33 : f32 to vector<8x128xf32>
    %130 = arith.addf %129, %128 : vector<8x128xf32>
    %131 = arith.divf %129, %130 : vector<8x128xf32>
    %132 = vector.extract_strided_slice %125 {offsets = [0, 128], sizes = [8, 128], strides = [1, 1]} : vector<8x512xf32> to vector<8x128xf32>
    %133 = arith.negf %132 : vector<8x128xf32>
    %134 = math.exp %133 : vector<8x128xf32>
    %cst_34 = arith.constant 1.000000e+00 : f32
    %135 = vector.broadcast %cst_34 : f32 to vector<8x128xf32>
    %136 = arith.addf %135, %134 : vector<8x128xf32>
    %137 = arith.divf %135, %136 : vector<8x128xf32>
    %138 = vector.extract_strided_slice %125 {offsets = [0, 256], sizes = [8, 128], strides = [1, 1]} : vector<8x512xf32> to vector<8x128xf32>
    %139 = math.tanh %138 : vector<8x128xf32>
    %140 = vector.extract_strided_slice %125 {offsets = [0, 384], sizes = [8, 128], strides = [1, 1]} : vector<8x512xf32> to vector<8x128xf32>
    %141 = arith.negf %140 : vector<8x128xf32>
    %142 = math.exp %141 : vector<8x128xf32>
    %cst_35 = arith.constant 1.000000e+00 : f32
    %143 = vector.broadcast %cst_35 : f32 to vector<8x128xf32>
    %144 = arith.addf %143, %142 : vector<8x128xf32>
    %145 = arith.divf %143, %144 : vector<8x128xf32>
    %146 = arith.mulf %137, %119 : vector<8x128xf32>
    %147 = arith.mulf %131, %139 : vector<8x128xf32>
    %148 = arith.addf %146, %147 : vector<8x128xf32>
    %149 = math.tanh %148 : vector<8x128xf32>
    %150 = arith.mulf %145, %149 : vector<8x128xf32>
    %c5 = arith.constant 5 : index
    %c0_36 = arith.constant 0 : index
    %c0_37 = arith.constant 0 : index
    %151 = vector.load %arg1[%c5, %c0_36, %c0_37] : memref<8x8x512xf32, #tpu.memory_space<vmem>>, vector<1x8x512xf32>
    %152 = vector.shape_cast %151 : vector<1x8x512xf32> to vector<8x512xf32>
    %cst_38 = arith.constant dense<0.000000e+00> : vector<8x512xf32>
    %153 = tpu.matmul %150, %3, %cst_38 {dimension_numbers = #tpu.dot_dimension_numbers<[1], [0], [0], [1], [0, 0, 1, 1], [], []>} : vector<8x128xf32>, vector<128x512xf32>, vector<8x512xf32> -> vector<8x512xf32>
    %154 = arith.addf %152, %153 : vector<8x512xf32>
    %155 = vector.extract_strided_slice %154 {offsets = [0, 0], sizes = [8, 128], strides = [1, 1]} : vector<8x512xf32> to vector<8x128xf32>
    %156 = arith.negf %155 : vector<8x128xf32>
    %157 = math.exp %156 : vector<8x128xf32>
    %cst_39 = arith.constant 1.000000e+00 : f32
    %158 = vector.broadcast %cst_39 : f32 to vector<8x128xf32>
    %159 = arith.addf %158, %157 : vector<8x128xf32>
    %160 = arith.divf %158, %159 : vector<8x128xf32>
    %161 = vector.extract_strided_slice %154 {offsets = [0, 128], sizes = [8, 128], strides = [1, 1]} : vector<8x512xf32> to vector<8x128xf32>
    %162 = arith.negf %161 : vector<8x128xf32>
    %163 = math.exp %162 : vector<8x128xf32>
    %cst_40 = arith.constant 1.000000e+00 : f32
    %164 = vector.broadcast %cst_40 : f32 to vector<8x128xf32>
    %165 = arith.addf %164, %163 : vector<8x128xf32>
    %166 = arith.divf %164, %165 : vector<8x128xf32>
    %167 = vector.extract_strided_slice %154 {offsets = [0, 256], sizes = [8, 128], strides = [1, 1]} : vector<8x512xf32> to vector<8x128xf32>
    %168 = math.tanh %167 : vector<8x128xf32>
    %169 = vector.extract_strided_slice %154 {offsets = [0, 384], sizes = [8, 128], strides = [1, 1]} : vector<8x512xf32> to vector<8x128xf32>
    %170 = arith.negf %169 : vector<8x128xf32>
    %171 = math.exp %170 : vector<8x128xf32>
    %cst_41 = arith.constant 1.000000e+00 : f32
    %172 = vector.broadcast %cst_41 : f32 to vector<8x128xf32>
    %173 = arith.addf %172, %171 : vector<8x128xf32>
    %174 = arith.divf %172, %173 : vector<8x128xf32>
    %175 = arith.mulf %166, %148 : vector<8x128xf32>
    %176 = arith.mulf %160, %168 : vector<8x128xf32>
    %177 = arith.addf %175, %176 : vector<8x128xf32>
    %178 = math.tanh %177 : vector<8x128xf32>
    %179 = arith.mulf %174, %178 : vector<8x128xf32>
    %c6 = arith.constant 6 : index
    %c0_42 = arith.constant 0 : index
    %c0_43 = arith.constant 0 : index
    %180 = vector.load %arg1[%c6, %c0_42, %c0_43] : memref<8x8x512xf32, #tpu.memory_space<vmem>>, vector<1x8x512xf32>
    %181 = vector.shape_cast %180 : vector<1x8x512xf32> to vector<8x512xf32>
    %cst_44 = arith.constant dense<0.000000e+00> : vector<8x512xf32>
    %182 = tpu.matmul %179, %3, %cst_44 {dimension_numbers = #tpu.dot_dimension_numbers<[1], [0], [0], [1], [0, 0, 1, 1], [], []>} : vector<8x128xf32>, vector<128x512xf32>, vector<8x512xf32> -> vector<8x512xf32>
    %183 = arith.addf %181, %182 : vector<8x512xf32>
    %184 = vector.extract_strided_slice %183 {offsets = [0, 0], sizes = [8, 128], strides = [1, 1]} : vector<8x512xf32> to vector<8x128xf32>
    %185 = arith.negf %184 : vector<8x128xf32>
    %186 = math.exp %185 : vector<8x128xf32>
    %cst_45 = arith.constant 1.000000e+00 : f32
    %187 = vector.broadcast %cst_45 : f32 to vector<8x128xf32>
    %188 = arith.addf %187, %186 : vector<8x128xf32>
    %189 = arith.divf %187, %188 : vector<8x128xf32>
    %190 = vector.extract_strided_slice %183 {offsets = [0, 128], sizes = [8, 128], strides = [1, 1]} : vector<8x512xf32> to vector<8x128xf32>
    %191 = arith.negf %190 : vector<8x128xf32>
    %192 = math.exp %191 : vector<8x128xf32>
    %cst_46 = arith.constant 1.000000e+00 : f32
    %193 = vector.broadcast %cst_46 : f32 to vector<8x128xf32>
    %194 = arith.addf %193, %192 : vector<8x128xf32>
    %195 = arith.divf %193, %194 : vector<8x128xf32>
    %196 = vector.extract_strided_slice %183 {offsets = [0, 256], sizes = [8, 128], strides = [1, 1]} : vector<8x512xf32> to vector<8x128xf32>
    %197 = math.tanh %196 : vector<8x128xf32>
    %198 = vector.extract_strided_slice %183 {offsets = [0, 384], sizes = [8, 128], strides = [1, 1]} : vector<8x512xf32> to vector<8x128xf32>
    %199 = arith.negf %198 : vector<8x128xf32>
    %200 = math.exp %199 : vector<8x128xf32>
    %cst_47 = arith.constant 1.000000e+00 : f32
    %201 = vector.broadcast %cst_47 : f32 to vector<8x128xf32>
    %202 = arith.addf %201, %200 : vector<8x128xf32>
    %203 = arith.divf %201, %202 : vector<8x128xf32>
    %204 = arith.mulf %195, %177 : vector<8x128xf32>
    %205 = arith.mulf %189, %197 : vector<8x128xf32>
    %206 = arith.addf %204, %205 : vector<8x128xf32>
    %207 = math.tanh %206 : vector<8x128xf32>
    %208 = arith.mulf %203, %207 : vector<8x128xf32>
    %c7 = arith.constant 7 : index
    %c0_48 = arith.constant 0 : index
    %c0_49 = arith.constant 0 : index
    %209 = vector.load %arg1[%c7, %c0_48, %c0_49] : memref<8x8x512xf32, #tpu.memory_space<vmem>>, vector<1x8x512xf32>
    %210 = vector.shape_cast %209 : vector<1x8x512xf32> to vector<8x512xf32>
    %cst_50 = arith.constant dense<0.000000e+00> : vector<8x512xf32>
    %211 = tpu.matmul %208, %3, %cst_50 {dimension_numbers = #tpu.dot_dimension_numbers<[1], [0], [0], [1], [0, 0, 1, 1], [], []>} : vector<8x128xf32>, vector<128x512xf32>, vector<8x512xf32> -> vector<8x512xf32>
    %212 = arith.addf %210, %211 : vector<8x512xf32>
    %213 = vector.extract_strided_slice %212 {offsets = [0, 0], sizes = [8, 128], strides = [1, 1]} : vector<8x512xf32> to vector<8x128xf32>
    %214 = arith.negf %213 : vector<8x128xf32>
    %215 = math.exp %214 : vector<8x128xf32>
    %cst_51 = arith.constant 1.000000e+00 : f32
    %216 = vector.broadcast %cst_51 : f32 to vector<8x128xf32>
    %217 = arith.addf %216, %215 : vector<8x128xf32>
    %218 = arith.divf %216, %217 : vector<8x128xf32>
    %219 = vector.extract_strided_slice %212 {offsets = [0, 128], sizes = [8, 128], strides = [1, 1]} : vector<8x512xf32> to vector<8x128xf32>
    %220 = arith.negf %219 : vector<8x128xf32>
    %221 = math.exp %220 : vector<8x128xf32>
    %cst_52 = arith.constant 1.000000e+00 : f32
    %222 = vector.broadcast %cst_52 : f32 to vector<8x128xf32>
    %223 = arith.addf %222, %221 : vector<8x128xf32>
    %224 = arith.divf %222, %223 : vector<8x128xf32>
    %225 = vector.extract_strided_slice %212 {offsets = [0, 256], sizes = [8, 128], strides = [1, 1]} : vector<8x512xf32> to vector<8x128xf32>
    %226 = math.tanh %225 : vector<8x128xf32>
    %227 = vector.extract_strided_slice %212 {offsets = [0, 384], sizes = [8, 128], strides = [1, 1]} : vector<8x512xf32> to vector<8x128xf32>
    %228 = arith.negf %227 : vector<8x128xf32>
    %229 = math.exp %228 : vector<8x128xf32>
    %cst_53 = arith.constant 1.000000e+00 : f32
    %230 = vector.broadcast %cst_53 : f32 to vector<8x128xf32>
    %231 = arith.addf %230, %229 : vector<8x128xf32>
    %232 = arith.divf %230, %231 : vector<8x128xf32>
    %233 = arith.mulf %224, %206 : vector<8x128xf32>
    %234 = arith.mulf %218, %226 : vector<8x128xf32>
    %235 = arith.addf %233, %234 : vector<8x128xf32>
    %236 = math.tanh %235 : vector<8x128xf32>
    %237 = arith.mulf %232, %236 : vector<8x128xf32>
    %c0_54 = arith.constant 0 : index
    %c0_55 = arith.constant 0 : index
    %238 = vector.load %arg4[%c0_54, %c0_55] : memref<8x128xf32, #tpu.memory_space<vmem>>, vector<8x128xf32>
    tpu.vector_store %arg4[%c0_54, %c0_55], %237 {strides = array<i32>} : memref<8x128xf32, #tpu.memory_space<vmem>>, vector<8x128xf32>,
    %c0_56 = arith.constant 0 : index
    %c0_57 = arith.constant 0 : index
    %239 = vector.load %arg5[%c0_56, %c0_57] : memref<8x128xf32, #tpu.memory_space<vmem>>, vector<8x128xf32>
    tpu.vector_store %arg5[%c0_56, %c0_57], %235 {strides = array<i32>} : memref<8x128xf32, #tpu.memory_space<vmem>>, vector<8x128xf32>,
    %c1_i32 = arith.constant 1 : i32
    %240 = arith.cmpi eq, %arg0, %c1_i32 : i32
    %241 = arith.extui %240 : i1 to i32
    %c0_i32_58 = arith.constant 0 : i32
    %242 = arith.cmpi ne, %241, %c0_i32_58 : i32
    scf.if %242 {
      %c0_59 = arith.constant 0 : index
      %c0_60 = arith.constant 0 : index
      %243 = vector.load %arg3[%c0_59, %c0_60] : memref<8x256xf32, #tpu.memory_space<vmem>>, vector<8x128xf32>
      tpu.vector_store %arg3[%c0_59, %c0_60], %237 {strides = array<i32>} : memref<8x256xf32, #tpu.memory_space<vmem>>, vector<8x128xf32>,
      %c0_61 = arith.constant 0 : index
      %c128 = arith.constant 128 : index
      %244 = vector.load %arg3[%c0_61, %c128] : memref<8x256xf32, #tpu.memory_space<vmem>>, vector<8x128xf32>
      tpu.vector_store %arg3[%c0_61, %c128], %235 {strides = array<i32>} : memref<8x256xf32, #tpu.memory_space<vmem>>, vector<8x128xf32>,
    } else {
    }
    return
  }
  func.func @transform_0(%arg0: i32) -> (i32, i32, i32) {
    %c0_i32 = arith.constant 0 : i32
    %c0_i32_0 = arith.constant 0 : i32
    %c0_i32_1 = arith.constant 0 : i32
    return %arg0, %c0_i32, %c0_i32_0 : i32, i32, i32
  }
  func.func @transform_1(%arg0: i32) -> (i32, i32) {
    %c0_i32 = arith.constant 0 : i32
    %c0_i32_0 = arith.constant 0 : i32
    %c0_i32_1 = arith.constant 0 : i32
    return %c0_i32, %c0_i32_0 : i32, i32
  }
  func.func @transform_2(%arg0: i32) -> (i32, i32) {
    %c0_i32 = arith.constant 0 : i32
    %c0_i32_0 = arith.constant 0 : i32
    %c0_i32_1 = arith.constant 0 : i32
    return %c0_i32, %c0_i32_0 : i32, i32
  }
}

module attributes {stable_mosaic.version = 11 : i64} {
  func.func @_input_projection_kernel(%arg0: i32, %arg1: memref<128x16xf32, #tpu.memory_space<vmem>>, %arg2: memref<16x128xf32, #tpu.memory_space<vmem>>, %arg3: memref<1x128xf32, #tpu.memory_space<vmem>>, %arg4: memref<128x512xf32, #tpu.memory_space<vmem>>, %arg5: memref<1x512xf32, #tpu.memory_space<vmem>>, %arg6: memref<128x512xf32, #tpu.memory_space<vmem>>) attributes {dimension_semantics = [#tpu.dimension_semantics<parallel>], iteration_bounds = array<i64: 1>, scalar_prefetch = 0 : i64, scratch_operands = 0 : i64, tpu.core_type = #tpu.core_type<tc>, window_params = [{transform_indices = @transform_0, window_bounds = array<i64: 128, 16>}, {pipeline_mode = #tpu.pipeline_mode<synchronous>, transform_indices = @transform_1, window_bounds = array<i64: 16, 128>}, {pipeline_mode = #tpu.pipeline_mode<synchronous>, transform_indices = @transform_2, window_bounds = array<i64: 1, 128>}, {pipeline_mode = #tpu.pipeline_mode<synchronous>, transform_indices = @transform_3, window_bounds = array<i64: 128, 512>}, {pipeline_mode = #tpu.pipeline_mode<synchronous>, transform_indices = @transform_4, window_bounds = array<i64: 1, 512>}, {transform_indices = @transform_5, window_bounds = array<i64: 128, 512>}]} {
    %c0 = arith.constant 0 : index
    %c0_0 = arith.constant 0 : index
    %0 = vector.load %arg1[%c0, %c0_0] : memref<128x16xf32, #tpu.memory_space<vmem>>, vector<128x16xf32>
    %c0_1 = arith.constant 0 : index
    %c0_2 = arith.constant 0 : index
    %1 = vector.load %arg2[%c0_1, %c0_2] : memref<16x128xf32, #tpu.memory_space<vmem>>, vector<16x128xf32>
    %cst = arith.constant dense<0.000000e+00> : vector<128x128xf32>
    %2 = tpu.matmul %0, %1, %cst {dimension_numbers = #tpu.dot_dimension_numbers<[1], [0], [0], [1], [0, 0, 1, 1], [], []>} : vector<128x16xf32>, vector<16x128xf32>, vector<128x128xf32> -> vector<128x128xf32>
    %c0_3 = arith.constant 0 : index
    %c0_4 = arith.constant 0 : index
    %3 = vector.load %arg3[%c0_3, %c0_4] : memref<1x128xf32, #tpu.memory_space<vmem>>, vector<1x128xf32>
    %4 = vector.broadcast %3 : vector<1x128xf32> to vector<128x128xf32>
    %5 = arith.addf %2, %4 : vector<128x128xf32>
    %cst_5 = arith.constant 0.000000e+00 : f32
    %6 = vector.broadcast %cst_5 : f32 to vector<128x128xf32>
    %7 = arith.maximumf %5, %6 : vector<128x128xf32>
    %c0_6 = arith.constant 0 : index
    %c0_7 = arith.constant 0 : index
    %8 = vector.load %arg4[%c0_6, %c0_7] : memref<128x512xf32, #tpu.memory_space<vmem>>, vector<128x512xf32>
    %cst_8 = arith.constant dense<0.000000e+00> : vector<128x512xf32>
    %9 = tpu.matmul %7, %8, %cst_8 {dimension_numbers = #tpu.dot_dimension_numbers<[1], [0], [0], [1], [0, 0, 1, 1], [], []>} : vector<128x128xf32>, vector<128x512xf32>, vector<128x512xf32> -> vector<128x512xf32>
    %c0_9 = arith.constant 0 : index
    %c0_10 = arith.constant 0 : index
    %10 = vector.load %arg5[%c0_9, %c0_10] : memref<1x512xf32, #tpu.memory_space<vmem>>, vector<1x512xf32>
    %11 = vector.broadcast %10 : vector<1x512xf32> to vector<128x512xf32>
    %12 = arith.addf %9, %11 : vector<128x512xf32>
    %c0_11 = arith.constant 0 : index
    %c0_12 = arith.constant 0 : index
    %13 = vector.load %arg6[%c0_11, %c0_12] : memref<128x512xf32, #tpu.memory_space<vmem>>, vector<128x512xf32>
    tpu.vector_store %arg6[%c0_11, %c0_12], %12 {strides = array<i32>} : memref<128x512xf32, #tpu.memory_space<vmem>>, vector<128x512xf32>,
    return
  }
  func.func @transform_0(%arg0: i32) -> (i32, i32) {
    %c0_i32 = arith.constant 0 : i32
    %c0_i32_0 = arith.constant 0 : i32
    return %arg0, %c0_i32 : i32, i32
  }
  func.func @transform_1(%arg0: i32) -> (i32, i32) {
    %c0_i32 = arith.constant 0 : i32
    %c0_i32_0 = arith.constant 0 : i32
    %c0_i32_1 = arith.constant 0 : i32
    return %c0_i32, %c0_i32_0 : i32, i32
  }
  func.func @transform_2(%arg0: i32) -> (i32, i32) {
    %c0_i32 = arith.constant 0 : i32
    %c0_i32_0 = arith.constant 0 : i32
    %c0_i32_1 = arith.constant 0 : i32
    return %c0_i32, %c0_i32_0 : i32, i32
  }
  func.func @transform_3(%arg0: i32) -> (i32, i32) {
    %c0_i32 = arith.constant 0 : i32
    %c0_i32_0 = arith.constant 0 : i32
    %c0_i32_1 = arith.constant 0 : i32
    return %c0_i32, %c0_i32_0 : i32, i32
  }
  func.func @transform_4(%arg0: i32) -> (i32, i32) {
    %c0_i32 = arith.constant 0 : i32
    %c0_i32_0 = arith.constant 0 : i32
    %c0_i32_1 = arith.constant 0 : i32
    return %c0_i32, %c0_i32_0 : i32, i32
  }
  func.func @transform_5(%arg0: i32) -> (i32, i32) {
    %c0_i32 = arith.constant 0 : i32
    %c0_i32_0 = arith.constant 0 : i32
    return %arg0, %c0_i32 : i32, i32
  }
}

</mosaic_0001>

<bundles_post_ra>
// kernel: video_encoder_forward.3
= control target key start
LH: loop header
LB: loop body
LE: loop exit
PB: predicated region body
PF: predicated region fallthrough
CT: control target
= control target key end

     0   :  { %s2382_s9 = smov 0   ;;  %s2999_s0 = inlined_call_operand.vmem [shape: f32[16,8,512], index: 0, kind: input, shape index: {}]   ;;  %s3000_s1 = inlined_call_operand.vmem [shape: f32[128,512], index: 1, kind: input, shape index: {}]   ;;  %s3001_s2 = inlined_call_operand.vmem [shape: f32[8,256], index: 2, kind: output, shape index: {}]  }
   0x1 LB: > { %s2388_s10 = sadd.s32 4294967295, %s2363_s9   ;;  %p1646_p0 = scmp.ge.s32.totalorder %s2363_s9, 1  ;;  %s2363_s9 = sphi %s2382_s9, %s12_s9  }
   0x2   : > { %p109_p1 = scmp.lt.s32.totalorder %s2363_s9, 3 }
   0x4   : > { %p110_p2 = pnand %p1646_p0, %p109_p1 }
   0x5   : > { %s1647_s11 = sshll.u32 (!%p110_p2), %s2388_s10, 3  ;;  %p1650_p4 = scmp.ne.s32.totalorder (!%p110_p2), %s2388_s10, 0 }
   0x6   : > { %113 = sbr.rel (%p110_p2) target bundleno = 2121 (0x849), region = 28  ;;  %p128_p3 = scmp.lt.s32.totalorder (!%p110_p2), %s1647_s11, 15 }
   0xd   : > { %s3003_s11 = smov (!%p128_p3, %s1647_s11), 15  ;;  %137 = sbr.rel (%p1650_p4) target bundleno = 20 (0x14), region = 32 }
   0xe   : > { %s1706_s12 = sshll.u32 %s3003_s11, 5  ;;  %v2365_v0 = vmov (!%p1650_p4), 0.0  }
   0xf   : > { %s2396_s15 = scalar_lea.vmem %s2999_s0, %s1706_s12  ;;  %138 = vst [vmem:[#allocation2] sm:$0xff] (!%p1650_p4), %v2365_v0  ;;  %139 = vst [vmem:[#allocation3] sm:$0xff] (!%p1650_p4), %v2365_v0 }
  0x10   : > { %140 = vst [vmem:[%s3001_s2] sm:$0xff] (!%p1650_p4), %v2365_v0  ;;  %141 = vst [vmem:[%s3001_s2 + $0x8] sm:$0xff] (!%p1650_p4), %v2365_v0 }
  0x14 PF: > { %v143_v1 = vld [vmem:[%s3000_s1 + $0x8] sm:$0xff]  ;;  %v142_v3 = vld [vmem:[%s3000_s1] sm:$0xff]  ;;  %v2366_v8 = vmov 0.0   ;;  %v145_v20 = vld [vmem:[%s3000_s1 + $0x18] sm:$0xff]  ;;  %p1703_p5 = scmp.ne.s32.totalorder %s2388_s10, 1 }
  0x15   : > { %v147_v2 = vld [vmem:[%s3000_s1 + $0x28] sm:$0xff]  ;;  %v146_v5 = vld [vmem:[%s3000_s1 + $0x20] sm:$0xff]  ;;  %276 = vmatprep.mubr.f32.mxu0 %v2366_v8  ;;  %347 = vmatprep.mubr.f32.mxu1 %v2366_v8  ;;  %v149_v21 = vld [vmem:[%s3000_s1 + $0x38] sm:$0xff] }
  0x16   : > { %v2414_v4 = vpack.c.bf16 %v147_v2, %v143_v1  ;;  %v151_v6 = vld [vmem:[%s3000_s1 + $0x48] sm:$0xff]  ;;  %v2427_v9 = vpack.c.bf16 %v146_v5, %v142_v3  ;;  %v150_v11 = vld [vmem:[%s3000_s1 + $0x40] sm:$0xff]  ;;  %v2468_v23 = vpack.c.bf16 %v149_v21, %v145_v20  ;;  %v144_v24 = vld [vmem:[%s3000_s1 + $0x10] sm:$0xff] }
  0x17   : > { %v155_v7 = vld [vmem:[%s3000_s1 + $0x68] sm:$0xff]  ;;  %v154_v12 = vld [vmem:[%s3000_s1 + $0x60] sm:$0xff]  ;;  %v148_v25 = vld [vmem:[%s3000_s1 + $0x30] sm:$0xff] }
  0x18   : > { %v2429_v10 = vpack.c.bf16 %v155_v7, %v151_v6  ;;  %v159_v13 = vld [vmem:[%s3000_s1 + $0x88] sm:$0xff]  ;;  %1708 = vmatprep.subr.bf16.mxu0 %v2414_v4  ;;  %v2445_v15 = vpack.c.bf16 %v154_v12, %v150_v11  ;;  %v158_v16 = vld [vmem:[%s3000_s1 + $0x80] sm:$0xff]  ;;  %v2476_v26 = vpack.c.bf16 %v148_v25, %v144_v24  ;;  %1740 = vmatprep.subr.bf16.mxu1 %v2468_v23  ;;  %v153_v28 = vld [vmem:[%s3000_s1 + $0x58] sm:$0xff] }
  0x19   : > { %v163_v14 = vld [vmem:[%s3000_s1 + $0xa8] sm:$0xff]  ;;  %1710 = vmatpush1.bf16.msra.mxu0 %v2427_v9  ;;  %v162_v17 = vld [vmem:[%s3000_s1 + $0xa0] sm:$0xff]  ;;  %v157_v29 = vld [vmem:[%s3000_s1 + $0x78] sm:$0xff] }
  0x1a   : > { %1712 = vmatprep.subr.bf16.mxu0 %v2429_v10  ;;  %v2454_v18 = vpack.c.bf16 %v163_v14, %v159_v13  ;;  %v167_v19 = vld [vmem:[%s3000_s1 + $0xc8] sm:$0xff]  ;;  %v2479_v27 = vpack.c.bf16 %v162_v17, %v158_v16  ;;  %v152_v30 = vld [vmem:[%s3000_s1 + $0x50] sm:$0xff]  ;;  %v166_v32 = vld [vmem:[%s3000_s1 + $0xc0] sm:$0xff]  ;;  %1742 = vmatpush1.bf16.msra.mxu1 %v2476_v26  ;;  %v2501_v34 = vpack.c.bf16 %v157_v29, %v153_v28 }
  0x1b   : > { %v171_v22 = vld [vmem:[%s3000_s1 + $0xe8] sm:$0xff]  ;;  %v170_v33 = vld [vmem:[%s3000_s1 + $0xe0] sm:$0xff]  ;;  %v156_v35 = vld [vmem:[%s3000_s1 + $0x70] sm:$0xff] }
  0x1c   : > { %v2492_v31 = vpack.c.bf16 %v171_v22, %v167_v19  ;;  %v175_v36 = vld [vmem:[%s3000_s1 + $0x108] sm:$0xff]  ;;  %v2512_v38 = vpack.c.bf16 %v156_v35, %v152_v30  ;;  %v161_v39 = vld [vmem:[%s3000_s1 + $0x98] sm:$0xff]  ;;  %1744 = vmatprep.subr.bf16.mxu1 %v2501_v34  ;;  %v160_v41 = vld [vmem:[%s3000_s1 + $0x90] sm:$0xff]  ;;  %v2528_v43 = vpack.c.bf16 %v170_v33, %v166_v32 }
  0x1d   : > { %1714 = vmatpush1.bf16.msra.mxu0 %v2445_v15  ;;  %v179_v37 = vld [vmem:[%s3000_s1 + $0x128] sm:$0xff]  ;;  %v165_v40 = vld [vmem:[%s3000_s1 + $0xb8] sm:$0xff]  ;;  %v164_v42 = vld [vmem:[%s3000_s1 + $0xb0] sm:$0xff] }
  0x1e   : > { %1716 = vmatprep.subr.bf16.mxu0 %v2454_v18  ;;  %v174_v44 = vld [vmem:[%s3000_s1 + $0x100] sm:$0xff]  ;;  %v2536_v46 = vpack.c.bf16 %v165_v40, %v161_v39  ;;  %v2539_v47 = vpack.c.bf16 %v179_v37, %v175_v36  ;;  %1746 = vmatpush1.bf16.msra.mxu1 %v2512_v38  ;;  %v183_v48 = vld [vmem:[%s3000_s1 + $0x148] sm:$0xff]  ;;  %v2545_v49 = vpack.c.bf16 %v164_v42, %v160_v41  ;;  %v169_v50 = vld [vmem:[%s3000_s1 + $0xd8] sm:$0xff] }
  0x1f   : > { %v178_v45 = vld [vmem:[%s3000_s1 + $0x120] sm:$0xff]  ;;  %v173_v51 = vld [vmem:[%s3000_s1 + $0xf8] sm:$0xff]  ;;  %v187_v52 = vld [vmem:[%s3000_s1 + $0x168] sm:$0xff] }
  0x20   : > { %1748 = vmatprep.subr.bf16.mxu1 %v2536_v46  ;;  %v2557_v53 = vpack.c.bf16 %v173_v51, %v169_v50  ;;  %v168_v54 = vld [vmem:[%s3000_s1 + $0xd0] sm:$0xff]  ;;  %v2566_v56 = vpack.c.bf16 %v178_v45, %v174_v44  ;;  %v177_v57 = vld [vmem:[%s3000_s1 + $0x118] sm:$0xff]  ;;  %v2575_v59 = vpack.c.bf16 %v187_v52, %v183_v48  ;;  %v182_v60 = vld [vmem:[%s3000_s1 + $0x140] sm:$0xff] }
  0x21   : > { %1718 = vmatpush1.bf16.msra.mxu0 %v2479_v27  ;;  %v172_v55 = vld [vmem:[%s3000_s1 + $0xf0] sm:$0xff]  ;;  %v181_v58 = vld [vmem:[%s3000_s1 + $0x138] sm:$0xff]  ;;  %v186_v61 = vld [vmem:[%s3000_s1 + $0x160] sm:$0xff] }
  0x22   : > { %1720 = vmatprep.subr.bf16.mxu0 %v2492_v31  ;;  %1750 = vmatpush1.bf16.msra.mxu1 %v2545_v49  ;;  %v191_v62 = vld [vmem:[%s3000_s1 + $0x188] sm:$0xff]  ;;  %v2587_v63 = vpack.c.bf16 %v172_v55, %v168_v54  ;;  %v2593_v1 = vpack.c.bf16 %v181_v58, %v177_v57  ;;  %v176_v2 = vld [vmem:[%s3000_s1 + $0x110] sm:$0xff]  ;;  %v185_v5 = vld [vmem:[%s3000_s1 + $0x158] sm:$0xff]  ;;  %v2608_v7 = vpack.c.bf16 %v186_v61, %v182_v60 }
  0x23   : > { %v195_v0 = vld [vmem:[%s3000_s1 + $0x1a8] sm:$0xff]  ;;  %1752 = vmatprep.subr.bf16.mxu1 %v2557_v53  ;;  %v180_v3 = vld [vmem:[%s3000_s1 + $0x130] sm:$0xff]  ;;  %v189_v6 = vld [vmem:[%s3000_s1 + $0x178] sm:$0xff] }
  0x24   : > { %v2611_v11 = vpack.c.bf16 %v195_v0, %v191_v62  ;;  %v190_v12 = vld [vmem:[%s3000_s1 + $0x180] sm:$0xff]  ;;  %v199_v14 = vld [vmem:[%s3000_s1 + $0x1c8] sm:$0xff]  ;;  %v2623_v16 = vpack.c.bf16 %v180_v3, %v176_v2  ;;  %v2629_v19 = vpack.c.bf16 %v189_v6, %v185_v5  ;;  %v184_v20 = vld [vmem:[%s3000_s1 + $0x150] sm:$0xff] }
  0x25   : > { %1722 = vmatpush1.bf16.msra.mxu0 %v2528_v43  ;;  %v194_v13 = vld [vmem:[%s3000_s1 + $0x1a0] sm:$0xff]  ;;  %v203_v17 = vld [vmem:[%s3000_s1 + $0x1e8] sm:$0xff]  ;;  %v188_v21 = vld [vmem:[%s3000_s1 + $0x170] sm:$0xff] }
  0x26   : > { %1724 = vmatprep.subr.bf16.mxu0 %v2539_v47  ;;  %1754 = vmatpush1.bf16.msra.mxu1 %v2587_v63  ;;  %v193_v22 = vld [vmem:[%s3000_s1 + $0x198] sm:$0xff]  ;;  %v2644_v25 = vpack.c.bf16 %v194_v13, %v190_v12  ;;  %v2647_v28 = vpack.c.bf16 %v203_v17, %v199_v14  ;;  %v198_v29 = vld [vmem:[%s3000_s1 + $0x1c0] sm:$0xff]  ;;  %v2656_v32 = vpack.c.bf16 %v188_v21, %v184_v20  ;;  %v192_v35 = vld [vmem:[%s3000_s1 + $0x190] sm:$0xff] }
  0x27   : > { %1756 = vmatprep.subr.bf16.mxu1 %v2593_v1  ;;  %v197_v24 = vld [vmem:[%s3000_s1 + $0x1b8] sm:$0xff]  ;;  %v202_v30 = vld [vmem:[%s3000_s1 + $0x1e0] sm:$0xff]  ;;  %v196_v36 = vld [vmem:[%s3000_s1 + $0x1b0] sm:$0xff] }
  0x28   : > { %v2659_v33 = vpack.c.bf16 %v197_v24, %v193_v22  ;;  %v201_v37 = vld [vmem:[%s3000_s1 + $0x1d8] sm:$0xff]  ;;  %v2674_v40 = vpack.c.bf16 %v202_v30, %v198_v29  ;;  %v2678_v41 = vpack.c.bf16 %v196_v36, %v192_v35  ;;  %v200_v44 = vld [vmem:[%s3000_s1 + $0x1d0] sm:$0xff]  ;;  %v206_v48 = vld [vmem:[#allocation2] sm:$0xff] }
  0x29   : > { %1726 = vmatpush1.bf16.msra.mxu0 %v2566_v56  ;;  %v205_v39 = vld [vmem:[%s3000_s1 + $0x1f8] sm:$0xff]  ;;  %v204_v45 = vld [vmem:[%s3000_s1 + $0x1f0] sm:$0xff]  ;;  %v208_v51 = vld [vmem:[%s2396_s15] sm:$0xff] }
  0x2a   : > { %1728 = vmatprep.subr.bf16.mxu0 %v2575_v59  ;;  %1758 = vmatpush1.bf16.msra.mxu1 %v2623_v16  ;;  %v2681_v42 = vpack.c.bf16 %v205_v39, %v201_v37  ;;  %v2691_v50 = vpack.c.bf16 %v204_v45, %v200_v44  ;;  %v209_v52 = vld [vmem:[%s2396_s15 + $0x8] sm:$0xff]  ;;  %v211_v62 = vld [vmem:[%s2396_s15 + $0x18] sm:$0xff]  ;;  %v210_v5 = vld [vmem:[%s2396_s15 + $0x10] sm:$0xff] }
  0x2b   : > { %1760 = vmatprep.subr.bf16.mxu1 %v2629_v19  ;;  %v207_v24 = vld [vmem:[#allocation3] sm:$0xff] }
  0x2d   : > { %1730 = vmatpush1.bf16.msra.mxu0 %v2608_v7 }
  0x2e   : > { %1732 = vmatprep.subr.bf16.mxu0 %v2611_v11  ;;  %1762 = vmatpush1.bf16.msra.mxu1 %v2656_v32 }
  0x2f   : > { %1764 = vmatprep.subr.bf16.mxu1 %v2659_v33 }
  0x31   : > { %1734 = vmatpush1.bf16.msra.mxu0 %v2644_v25 }
  0x32   : > { %1736 = vmatprep.subr.bf16.mxu0 %v2647_v28  ;;  %1766 = vmatpush1.bf16.msra.mxu1 %v2678_v41 }
  0x33   : > { %1768 = vmatprep.subr.bf16.mxu1 %v2681_v42 }
  0x35   : > { %1738 = vmatpush1.bf16.msra.mxu0 %v2674_v40 }
  0x36   : > { %1772 = vmatprep.subr.bf16.mxu0 %v2414_v4  ;;  %1770 = vmatpush1.bf16.msra.mxu1 %v2691_v50 }
  0x37   : > { %1804 = vmatprep.subr.bf16.mxu1 %v2468_v23 }
  0x38   : > { %277 = vmatmul.mubr.f32.vlgmr.msra.gmra.mrb[0].mxu0 %v206_v48 }
  0x39   : > { %1774 = vmatpush1.bf16.msra.mxu0 %v2427_v9  ;;  %451 = vmatprep.mubr.f32.mxu0 %v2366_v8 }
  0x3a   : > { %1776 = vmatprep.subr.bf16.mxu0 %v2429_v10  ;;  %348 = vmatmul.mubr.f32.vlgmr.msra.gmra.mrb[0].mxu1 %v206_v48 }
  0x3b   : > { %1806 = vmatpush1.bf16.msra.mxu1 %v2476_v26  ;;  %522 = vmatprep.mubr.f32.mxu1 %v2366_v8 }
  0x3c   : > { %1808 = vmatprep.subr.bf16.mxu1 %v2501_v34 }
  0x3d   : > { %1778 = vmatpush1.bf16.msra.mxu0 %v2445_v15 }
  0x3e   : > { %1780 = vmatprep.subr.bf16.mxu0 %v2454_v18 }
  0x3f   : > { %1810 = vmatpush1.bf16.msra.mxu1 %v2512_v38 }
  0x40   : > { %1812 = vmatprep.subr.bf16.mxu1 %v2536_v46 }
  0x41   : > { %1782 = vmatpush1.bf16.msra.mxu0 %v2479_v27 }
  0x42   : > { %1784 = vmatprep.subr.bf16.mxu0 %v2492_v31 }
  0x43   : > { %1814 = vmatpush1.bf16.msra.mxu1 %v2545_v49 }
  0x44   : > { %1816 = vmatprep.subr.bf16.mxu1 %v2557_v53 }
  0x45   : > { %1786 = vmatpush1.bf16.msra.mxu0 %v2528_v43 }
  0x46   : > { %1788 = vmatprep.subr.bf16.mxu0 %v2539_v47 }
  0x47   : > { %1818 = vmatpush1.bf16.msra.mxu1 %v2587_v63 }
  0x48   : > { %1820 = vmatprep.subr.bf16.mxu1 %v2593_v1 }
  0x49   : > { %1790 = vmatpush1.bf16.msra.mxu0 %v2566_v56 }
  0x4a   : > { %1792 = vmatprep.subr.bf16.mxu0 %v2575_v59 }
  0x4b   : > { %1822 = vmatpush1.bf16.msra.mxu1 %v2623_v16 }
  0x4c   : > { %1824 = vmatprep.subr.bf16.mxu1 %v2629_v19 }
  0x4d   : > { %1794 = vmatpush1.bf16.msra.mxu0 %v2608_v7 }
  0x4e   : > { %1796 = vmatprep.subr.bf16.mxu0 %v2611_v11 }
  0x4f   : > { %1826 = vmatpush1.bf16.msra.mxu1 %v2656_v32 }
  0x50   : > { %1828 = vmatprep.subr.bf16.mxu1 %v2659_v33 }
  0x51   : > { %1798 = vmatpush1.bf16.msra.mxu0 %v2644_v25 }
  0x52   : > { %1800 = vmatprep.subr.bf16.mxu0 %v2647_v28 }
  0x53   : > { %1830 = vmatpush1.bf16.msra.mxu1 %v2678_v41 }
  0x54   : > { %1832 = vmatprep.subr.bf16.mxu1 %v2681_v42 }
  0x55   : > { %1802 = vmatpush1.bf16.msra.mxu0 %v2674_v40 }
  0x56   : > { %1836 = vmatprep.subr.bf16.mxu0 %v2414_v4 }
  0x57   : > { %1834 = vmatpush1.bf16.msra.mxu1 %v2691_v50 }
  0x58   : > { %1868 = vmatprep.subr.bf16.mxu1 %v2468_v23 }
 0x10b   : > { %v278_v54 = vpop.f32.mrb[0].mxu0 }
 0x10c   : > { %v354_v55 = vadd.f32 %v278_v54, %v208_v51  ;;  %v280_v57 = vpop.f32.mrb[1].mxu0  ;;  %v1654_v51 = vld [vmem:[%s2396_s15 + $0x20] sm:$0xff] }
 0x10d   : > { %v355_v58 = vadd.f32 %v280_v57, %v209_v52  ;;  %v349_v0 = vpop.f32.mrb[0].mxu1  ;;  %v1655_v52 = vld [vmem:[%s2396_s15 + $0x28] sm:$0xff] }
 0x10e   : > { %v1651_v60 = vmul.f32 -1.442695, %v354_v55  ;;  %v351_v2 = vpop.f32.mrb[1].mxu1  ;;  %v356_v12 = vadd.f32 %v349_v0, %v210_v5  ;;  %v1656_v5 = vld [vmem:[%s2396_s15 + $0x30] sm:$0xff] }
 0x10f   : > { %v1652_v61 = vmul.f32 -1.442695, %v355_v58  ;;  %v357_v3 = vadd.f32 %v351_v2, %v211_v62  ;;  %v1657_v2 = vld [vmem:[%s2396_s15 + $0x38] sm:$0xff] }
 0x110   : > { %2229 = vpow2.f32 %v1651_v60 }
 0x111   : > { %2231 = vpow2.f32 %v1652_v61  ;;  %v1653_v6 = vmul.f32 -1.442695, %v357_v3 }
 0x113   : > { %2233 = vpow2.f32 %v1653_v6 }
 0x114   : > { %2235 = vtanh.f32 %v356_v12 }
 0x11a   : > { %v2230_v13 = vpop.eup %2229 }
 0x11b   : > { %v2232_v14 = vpop.eup %2231  ;;  %v361_v17 = vadd.f32 1.0, %v2230_v13 }
 0x11c   : > { %v367_v20 = vadd.f32 1.0, %v2232_v14 }
 0x11d   : > { %2237 = vrcp.f32 %v361_v17  ;;  %v2234_v21 = vpop.eup %2233 }
 0x11e   : > { %2239 = vrcp.f32 %v367_v20  ;;  %v2236_v22 = vpop.eup %2235  ;;  %v374_v30 = vadd.f32 1.0, %v2234_v21 }
 0x120   : > { %2241 = vrcp.f32 %v374_v30 }
 0x127   : > { %v2238_v29 = vpop.eup %2237 }
 0x128   : > { %v2240_v35 = vpop.eup %2239  ;;  %v378_v36 = vmul.f32 %v2238_v29, %v2236_v22 }
 0x129   : > { %v377_v37 = vmul.f32 %v2240_v35, %v207_v24 }
 0x12a   : > { %v2242_v44 = vpop.eup %2241 }
 0x12b   : > { %v2735_v39 = vadd.f32 %v378_v36, %v377_v37 }
 0x12d   : > { %2243 = vtanh.f32 %v2735_v39 }
 0x137   : > { %v2244_v45 = vpop.eup %2243 }
 0x138   : > { %v381_v48 = vmul.f32 %v2244_v45, %v2242_v44 }
 0x13a   : > { %452 = vmatmul.mubr.f32.vlgmr.msra.gmra.mrb[2].mxu0 %v381_v48  ;;  %523 = vmatmul.mubr.f32.vlgmr.msra.gmra.mrb[2].mxu1 %v381_v48 }
 0x13b   : > { %1838 = vmatpush1.bf16.msra.mxu0 %v2427_v9  ;;  %1870 = vmatpush1.bf16.msra.mxu1 %v2476_v26 }
 0x13c   : > { %1840 = vmatprep.subr.bf16.mxu0 %v2429_v10  ;;  %1872 = vmatprep.subr.bf16.mxu1 %v2501_v34 }
 0x13d   : > { %626 = vmatprep.mubr.f32.mxu0 %v2366_v8  ;;  %697 = vmatprep.mubr.f32.mxu1 %v2366_v8 }
 0x13f   : > { %1842 = vmatpush1.bf16.msra.mxu0 %v2445_v15  ;;  %1874 = vmatpush1.bf16.msra.mxu1 %v2512_v38 }
 0x140   : > { %1844 = vmatprep.subr.bf16.mxu0 %v2454_v18  ;;  %1876 = vmatprep.subr.bf16.mxu1 %v2536_v46 }
 0x143   : > { %1846 = vmatpush1.bf16.msra.mxu0 %v2479_v27  ;;  %1878 = vmatpush1.bf16.msra.mxu1 %v2545_v49 }
 0x144   : > { %1848 = vmatprep.subr.bf16.mxu0 %v2492_v31  ;;  %1880 = vmatprep.subr.bf16.mxu1 %v2557_v53 }
 0x147   : > { %1850 = vmatpush1.bf16.msra.mxu0 %v2528_v43  ;;  %1882 = vmatpush1.bf16.msra.mxu1 %v2587_v63 }
 0x148   : > { %1852 = vmatprep.subr.bf16.mxu0 %v2539_v47  ;;  %1884 = vmatprep.subr.bf16.mxu1 %v2593_v1 }
 0x14b   : > { %1854 = vmatpush1.bf16.msra.mxu0 %v2566_v56  ;;  %1886 = vmatpush1.bf16.msra.mxu1 %v2623_v16 }
 0x14c   : > { %1856 = vmatprep.subr.bf16.mxu0 %v2575_v59  ;;  %1888 = vmatprep.subr.bf16.mxu1 %v2629_v19 }
 0x14f   : > { %1858 = vmatpush1.bf16.msra.mxu0 %v2608_v7  ;;  %1890 = vmatpush1.bf16.msra.mxu1 %v2656_v32 }
 0x150   : > { %1860 = vmatprep.subr.bf16.mxu0 %v2611_v11  ;;  %1892 = vmatprep.subr.bf16.mxu1 %v2659_v33 }
 0x153   : > { %1862 = vmatpush1.bf16.msra.mxu0 %v2644_v25  ;;  %1894 = vmatpush1.bf16.msra.mxu1 %v2678_v41 }
 0x154   : > { %1864 = vmatprep.subr.bf16.mxu0 %v2647_v28  ;;  %1896 = vmatprep.subr.bf16.mxu1 %v2681_v42 }
 0x157   : > { %1866 = vmatpush1.bf16.msra.mxu0 %v2674_v40  ;;  %1898 = vmatpush1.bf16.msra.mxu1 %v2691_v50 }
 0x158   : > { %1900 = vmatprep.subr.bf16.mxu0 %v2414_v4  ;;  %1932 = vmatprep.subr.bf16.mxu1 %v2468_v23 }
 0x20d   : > { %v453_v54 = vpop.f32.mrb[2].mxu0  ;;  %v524_v55 = vpop.f32.mrb[2].mxu1 }
 0x20e   : > { %v529_v57 = vadd.f32 %v1654_v51, %v453_v54  ;;  %v455_v58 = vpop.f32.mrb[3].mxu0  ;;  %v526_v60 = vpop.f32.mrb[3].mxu1  ;;  %v531_v12 = vadd.f32 %v1656_v5, %v524_v55  ;;  %v1662_v51 = vld [vmem:[%s2396_s15 + $0x48] sm:$0xff] }
 0x20f   : > { %v530_v61 = vadd.f32 %v1655_v52, %v455_v58  ;;  %v532_v3 = vadd.f32 %v1657_v2, %v526_v60 }
 0x210   : > { %v1658_v62 = vmul.f32 -1.442695, %v529_v57 }
 0x211   : > { %v1659_v0 = vmul.f32 -1.442695, %v530_v61  ;;  %v1660_v6 = vmul.f32 -1.442695, %v532_v3  ;;  %v1663_v3 = vld [vmem:[%s2396_s15 + $0x50] sm:$0xff] }
 0x212   : > { %2245 = vpow2.f32 %v1658_v62 }
 0x213   : > { %2247 = vpow2.f32 %v1659_v0  ;;  %v1664_v0 = vld [vmem:[%s2396_s15 + $0x58] sm:$0xff] }
 0x214   : > { %2249 = vpow2.f32 %v1660_v6 }
 0x215   : > { %2251 = vtanh.f32 %v531_v12 }
 0x21c   : > { %v2246_v13 = vpop.eup %2245 }
 0x21d   : > { %v2248_v14 = vpop.eup %2247  ;;  %v536_v17 = vadd.f32 1.0, %v2246_v13 }
 0x21e   : > { %v542_v20 = vadd.f32 1.0, %v2248_v14  ;;  %v2250_v21 = vpop.eup %2249 }
 0x21f   : > { %2253 = vrcp.f32 %v536_v17  ;;  %v2252_v22 = vpop.eup %2251  ;;  %v549_v35 = vadd.f32 1.0, %v2250_v21 }
 0x220   : > { %2255 = vrcp.f32 %v542_v20 }
 0x221   : > { %2257 = vrcp.f32 %v549_v35 }
 0x229   : > { %v2254_v24 = vpop.eup %2253 }
 0x22a   : > { %v2256_v29 = vpop.eup %2255  ;;  %v553_v30 = vmul.f32 %v2254_v24, %v2252_v22 }
 0x22b   : > { %v552_v36 = vmul.f32 %v2256_v29, %v2735_v39  ;;  %v2258_v44 = vpop.eup %2257  ;;  %v1661_v39 = vld [vmem:[%s2396_s15 + $0x40] sm:$0xff] }
 0x22d   : > { %v2777_v37 = vadd.f32 %v553_v30, %v552_v36 }
 0x22f   : > { %2259 = vtanh.f32 %v2777_v37 }
 0x239   : > { %v2260_v45 = vpop.eup %2259 }
 0x23a   : > { %v556_v48 = vmul.f32 %v2260_v45, %v2258_v44 }
 0x23c   : > { %627 = vmatmul.mubr.f32.vlgmr.msra.gmra.mrb[4].mxu0 %v556_v48  ;;  %698 = vmatmul.mubr.f32.vlgmr.msra.gmra.mrb[4].mxu1 %v556_v48 }
 0x23d   : > { %1902 = vmatpush1.bf16.msra.mxu0 %v2427_v9  ;;  %1934 = vmatpush1.bf16.msra.mxu1 %v2476_v26 }
 0x23e   : > { %1904 = vmatprep.subr.bf16.mxu0 %v2429_v10  ;;  %1936 = vmatprep.subr.bf16.mxu1 %v2501_v34 }
 0x23f   : > { %801 = vmatprep.mubr.f32.mxu0 %v2366_v8  ;;  %872 = vmatprep.mubr.f32.mxu1 %v2366_v8 }
 0x241   : > { %1906 = vmatpush1.bf16.msra.mxu0 %v2445_v15  ;;  %1938 = vmatpush1.bf16.msra.mxu1 %v2512_v38 }
 0x242   : > { %1908 = vmatprep.subr.bf16.mxu0 %v2454_v18  ;;  %1940 = vmatprep.subr.bf16.mxu1 %v2536_v46 }
 0x245   : > { %1910 = vmatpush1.bf16.msra.mxu0 %v2479_v27  ;;  %1942 = vmatpush1.bf16.msra.mxu1 %v2545_v49 }
 0x246   : > { %1912 = vmatprep.subr.bf16.mxu0 %v2492_v31  ;;  %1944 = vmatprep.subr.bf16.mxu1 %v2557_v53 }
 0x249   : > { %1914 = vmatpush1.bf16.msra.mxu0 %v2528_v43  ;;  %1946 = vmatpush1.bf16.msra.mxu1 %v2587_v63 }
 0x24a   : > { %1916 = vmatprep.subr.bf16.mxu0 %v2539_v47  ;;  %1948 = vmatprep.subr.bf16.mxu1 %v2593_v1 }
 0x24d   : > { %1918 = vmatpush1.bf16.msra.mxu0 %v2566_v56  ;;  %1950 = vmatpush1.bf16.msra.mxu1 %v2623_v16 }
 0x24e   : > { %1920 = vmatprep.subr.bf16.mxu0 %v2575_v59  ;;  %1952 = vmatprep.subr.bf16.mxu1 %v2629_v19 }
 0x251   : > { %1922 = vmatpush1.bf16.msra.mxu0 %v2608_v7  ;;  %1954 = vmatpush1.bf16.msra.mxu1 %v2656_v32 }
 0x252   : > { %1924 = vmatprep.subr.bf16.mxu0 %v2611_v11  ;;  %1956 = vmatprep.subr.bf16.mxu1 %v2659_v33 }
 0x255   : > { %1926 = vmatpush1.bf16.msra.mxu0 %v2644_v25  ;;  %1958 = vmatpush1.bf16.msra.mxu1 %v2678_v41 }
 0x256   : > { %1928 = vmatprep.subr.bf16.mxu0 %v2647_v28  ;;  %1960 = vmatprep.subr.bf16.mxu1 %v2681_v42 }
 0x259   : > { %1930 = vmatpush1.bf16.msra.mxu0 %v2674_v40  ;;  %1962 = vmatpush1.bf16.msra.mxu1 %v2691_v50 }
 0x25a   : > { %1964 = vmatprep.subr.bf16.mxu0 %v2414_v4  ;;  %1996 = vmatprep.subr.bf16.mxu1 %v2468_v23 }
 0x30f   : > { %v628_v52 = vpop.f32.mrb[4].mxu0  ;;  %v699_v54 = vpop.f32.mrb[4].mxu1 }
 0x310   : > { %v704_v55 = vadd.f32 %v1661_v39, %v628_v52  ;;  %v630_v57 = vpop.f32.mrb[5].mxu0  ;;  %v701_v58 = vpop.f32.mrb[5].mxu1  ;;  %v706_v6 = vadd.f32 %v1663_v3, %v699_v54  ;;  %v1669_v39 = vld [vmem:[%s2396_s15 + $0x68] sm:$0xff] }
 0x311   : > { %v705_v60 = vadd.f32 %v1662_v51, %v630_v57  ;;  %v707_v2 = vadd.f32 %v1664_v0, %v701_v58 }
 0x312   : > { %v1665_v61 = vmul.f32 -1.442695, %v704_v55 }
 0x313   : > { %v1666_v62 = vmul.f32 -1.442695, %v705_v60  ;;  %v1667_v5 = vmul.f32 -1.442695, %v707_v2  ;;  %v1670_v2 = vld [vmem:[%s2396_s15 + $0x70] sm:$0xff] }
 0x314   : > { %2261 = vpow2.f32 %v1665_v61 }
 0x315   : > { %2263 = vpow2.f32 %v1666_v62  ;;  %v1671_v62 = vld [vmem:[%s2396_s15 + $0x78] sm:$0xff] }
 0x316   : > { %2265 = vpow2.f32 %v1667_v5 }
 0x317   : > { %2267 = vtanh.f32 %v706_v6 }
 0x31e   : > { %v2262_v12 = vpop.eup %2261 }
 0x31f   : > { %v2264_v13 = vpop.eup %2263  ;;  %v711_v14 = vadd.f32 1.0, %v2262_v12 }
 0x320   : > { %v717_v17 = vadd.f32 1.0, %v2264_v13  ;;  %v2266_v20 = vpop.eup %2265 }
 0x321   : > { %2269 = vrcp.f32 %v711_v14  ;;  %v2268_v21 = vpop.eup %2267  ;;  %v724_v30 = vadd.f32 1.0, %v2266_v20 }
 0x322   : > { %2271 = vrcp.f32 %v717_v17 }
 0x323   : > { %2273 = vrcp.f32 %v724_v30 }
 0x32b   : > { %v2270_v22 = vpop.eup %2269 }
 0x32c   : > { %v2272_v24 = vpop.eup %2271  ;;  %v728_v29 = vmul.f32 %v2270_v22, %v2268_v21 }
 0x32d   : > { %v727_v35 = vmul.f32 %v2272_v24, %v2777_v37  ;;  %v2274_v44 = vpop.eup %2273  ;;  %v1668_v37 = vld [vmem:[%s2396_s15 + $0x60] sm:$0xff] }
 0x32f   : > { %v2819_v36 = vadd.f32 %v728_v29, %v727_v35 }
 0x331   : > { %2275 = vtanh.f32 %v2819_v36 }
 0x33b   : > { %v2276_v45 = vpop.eup %2275 }
 0x33c   : > { %v731_v48 = vmul.f32 %v2276_v45, %v2274_v44 }
 0x33e   : > { %802 = vmatmul.mubr.f32.vlgmr.msra.gmra.mrb[6].mxu0 %v731_v48  ;;  %873 = vmatmul.mubr.f32.vlgmr.msra.gmra.mrb[6].mxu1 %v731_v48 }
 0x33f   : > { %1966 = vmatpush1.bf16.msra.mxu0 %v2427_v9  ;;  %1998 = vmatpush1.bf16.msra.mxu1 %v2476_v26 }
 0x340   : > { %1968 = vmatprep.subr.bf16.mxu0 %v2429_v10  ;;  %2000 = vmatprep.subr.bf16.mxu1 %v2501_v34 }
 0x341   : > { %976 = vmatprep.mubr.f32.mxu0 %v2366_v8  ;;  %1047 = vmatprep.mubr.f32.mxu1 %v2366_v8 }
 0x343   : > { %1970 = vmatpush1.bf16.msra.mxu0 %v2445_v15  ;;  %2002 = vmatpush1.bf16.msra.mxu1 %v2512_v38 }
 0x344   : > { %1972 = vmatprep.subr.bf16.mxu0 %v2454_v18  ;;  %2004 = vmatprep.subr.bf16.mxu1 %v2536_v46 }
 0x347   : > { %1974 = vmatpush1.bf16.msra.mxu0 %v2479_v27  ;;  %2006 = vmatpush1.bf16.msra.mxu1 %v2545_v49 }
 0x348   : > { %1976 = vmatprep.subr.bf16.mxu0 %v2492_v31  ;;  %2008 = vmatprep.subr.bf16.mxu1 %v2557_v53 }
 0x34b   : > { %1978 = vmatpush1.bf16.msra.mxu0 %v2528_v43  ;;  %2010 = vmatpush1.bf16.msra.mxu1 %v2587_v63 }
 0x34c   : > { %1980 = vmatprep.subr.bf16.mxu0 %v2539_v47  ;;  %2012 = vmatprep.subr.bf16.mxu1 %v2593_v1 }
 0x34f   : > { %1982 = vmatpush1.bf16.msra.mxu0 %v2566_v56  ;;  %2014 = vmatpush1.bf16.msra.mxu1 %v2623_v16 }
 0x350   : > { %1984 = vmatprep.subr.bf16.mxu0 %v2575_v59  ;;  %2016 = vmatprep.subr.bf16.mxu1 %v2629_v19 }
 0x353   : > { %1986 = vmatpush1.bf16.msra.mxu0 %v2608_v7  ;;  %2018 = vmatpush1.bf16.msra.mxu1 %v2656_v32 }
 0x354   : > { %1988 = vmatprep.subr.bf16.mxu0 %v2611_v11  ;;  %2020 = vmatprep.subr.bf16.mxu1 %v2659_v33 }
 0x357   : > { %1990 = vmatpush1.bf16.msra.mxu0 %v2644_v25  ;;  %2022 = vmatpush1.bf16.msra.mxu1 %v2678_v41 }
 0x358   : > { %1992 = vmatprep.subr.bf16.mxu0 %v2647_v28  ;;  %2024 = vmatprep.subr.bf16.mxu1 %v2681_v42 }
 0x35b   : > { %1994 = vmatpush1.bf16.msra.mxu0 %v2674_v40  ;;  %2026 = vmatpush1.bf16.msra.mxu1 %v2691_v50 }
 0x35c   : > { %2028 = vmatprep.subr.bf16.mxu0 %v2414_v4  ;;  %2060 = vmatprep.subr.bf16.mxu1 %v2468_v23 }
 0x411   : > { %v803_v51 = vpop.f32.mrb[6].mxu0  ;;  %v874_v52 = vpop.f32.mrb[6].mxu1 }
 0x412   : > { %v879_v54 = vadd.f32 %v1668_v37, %v803_v51  ;;  %v805_v55 = vpop.f32.mrb[7].mxu0  ;;  %v876_v57 = vpop.f32.mrb[7].mxu1  ;;  %v881_v5 = vadd.f32 %v1670_v2, %v874_v52  ;;  %v1676_v37 = vld [vmem:[%s2396_s15 + $0x88] sm:$0xff] }
 0x413   : > { %v880_v58 = vadd.f32 %v1669_v39, %v805_v55  ;;  %v882_v0 = vadd.f32 %v1671_v62, %v876_v57 }
 0x414   : > { %v1672_v60 = vmul.f32 -1.442695, %v879_v54 }
 0x415   : > { %v1673_v61 = vmul.f32 -1.442695, %v880_v58  ;;  %v1674_v3 = vmul.f32 -1.442695, %v882_v0  ;;  %v1677_v0 = vld [vmem:[%s2396_s15 + $0x90] sm:$0xff] }
 0x416   : > { %2277 = vpow2.f32 %v1672_v60 }
 0x417   : > { %2279 = vpow2.f32 %v1673_v61  ;;  %v1678_v61 = vld [vmem:[%s2396_s15 + $0x98] sm:$0xff] }
 0x418   : > { %2281 = vpow2.f32 %v1674_v3 }
 0x419   : > { %2283 = vtanh.f32 %v881_v5 }
 0x420   : > { %v2278_v6 = vpop.eup %2277 }
 0x421   : > { %v2280_v12 = vpop.eup %2279  ;;  %v886_v13 = vadd.f32 1.0, %v2278_v6 }
 0x422   : > { %v892_v14 = vadd.f32 1.0, %v2280_v12  ;;  %v2282_v17 = vpop.eup %2281 }
 0x423   : > { %2285 = vrcp.f32 %v886_v13  ;;  %v2284_v20 = vpop.eup %2283  ;;  %v899_v29 = vadd.f32 1.0, %v2282_v17 }
 0x424   : > { %2287 = vrcp.f32 %v892_v14 }
 0x425   : > { %2289 = vrcp.f32 %v899_v29 }
 0x42d   : > { %v2286_v21 = vpop.eup %2285 }
 0x42e   : > { %v2288_v22 = vpop.eup %2287  ;;  %v903_v24 = vmul.f32 %v2286_v21, %v2284_v20 }
 0x42f   : > { %v902_v30 = vmul.f32 %v2288_v22, %v2819_v36  ;;  %v2290_v44 = vpop.eup %2289  ;;  %v1675_v36 = vld [vmem:[%s2396_s15 + $0x80] sm:$0xff] }
 0x431   : > { %v2861_v35 = vadd.f32 %v903_v24, %v902_v30 }
 0x433   : > { %2291 = vtanh.f32 %v2861_v35 }
 0x43d   : > { %v2292_v45 = vpop.eup %2291 }
 0x43e   : > { %v906_v48 = vmul.f32 %v2292_v45, %v2290_v44 }
 0x440   : > { %977 = vmatmul.mubr.f32.vlgmr.msra.gmra.mrb[8].mxu0 %v906_v48  ;;  %1048 = vmatmul.mubr.f32.vlgmr.msra.gmra.mrb[8].mxu1 %v906_v48 }
 0x441   : > { %2030 = vmatpush1.bf16.msra.mxu0 %v2427_v9  ;;  %2062 = vmatpush1.bf16.msra.mxu1 %v2476_v26 }
 0x442   : > { %2032 = vmatprep.subr.bf16.mxu0 %v2429_v10  ;;  %2064 = vmatprep.subr.bf16.mxu1 %v2501_v34 }
 0x443   : > { %1151 = vmatprep.mubr.f32.mxu0 %v2366_v8  ;;  %1222 = vmatprep.mubr.f32.mxu1 %v2366_v8 }
 0x445   : > { %2034 = vmatpush1.bf16.msra.mxu0 %v2445_v15  ;;  %2066 = vmatpush1.bf16.msra.mxu1 %v2512_v38 }
 0x446   : > { %2036 = vmatprep.subr.bf16.mxu0 %v2454_v18  ;;  %2068 = vmatprep.subr.bf16.mxu1 %v2536_v46 }
 0x449   : > { %2038 = vmatpush1.bf16.msra.mxu0 %v2479_v27  ;;  %2070 = vmatpush1.bf16.msra.mxu1 %v2545_v49 }
 0x44a   : > { %2040 = vmatprep.subr.bf16.mxu0 %v2492_v31  ;;  %2072 = vmatprep.subr.bf16.mxu1 %v2557_v53 }
 0x44d   : > { %2042 = vmatpush1.bf16.msra.mxu0 %v2528_v43  ;;  %2074 = vmatpush1.bf16.msra.mxu1 %v2587_v63 }
 0x44e   : > { %2044 = vmatprep.subr.bf16.mxu0 %v2539_v47  ;;  %2076 = vmatprep.subr.bf16.mxu1 %v2593_v1 }
 0x451   : > { %2046 = vmatpush1.bf16.msra.mxu0 %v2566_v56  ;;  %2078 = vmatpush1.bf16.msra.mxu1 %v2623_v16 }
 0x452   : > { %2048 = vmatprep.subr.bf16.mxu0 %v2575_v59  ;;  %2080 = vmatprep.subr.bf16.mxu1 %v2629_v19 }
 0x455   : > { %2050 = vmatpush1.bf16.msra.mxu0 %v2608_v7  ;;  %2082 = vmatpush1.bf16.msra.mxu1 %v2656_v32 }
 0x456   : > { %2052 = vmatprep.subr.bf16.mxu0 %v2611_v11  ;;  %2084 = vmatprep.subr.bf16.mxu1 %v2659_v33 }
 0x459   : > { %2054 = vmatpush1.bf16.msra.mxu0 %v2644_v25  ;;  %2086 = vmatpush1.bf16.msra.mxu1 %v2678_v41 }
 0x45a   : > { %2056 = vmatprep.subr.bf16.mxu0 %v2647_v28  ;;  %2088 = vmatprep.subr.bf16.mxu1 %v2681_v42 }
 0x45d   : > { %2058 = vmatpush1.bf16.msra.mxu0 %v2674_v40  ;;  %2090 = vmatpush1.bf16.msra.mxu1 %v2691_v50 }
 0x45e   : > { %2092 = vmatprep.subr.bf16.mxu0 %v2414_v4  ;;  %2124 = vmatprep.subr.bf16.mxu1 %v2468_v23 }
 0x513   : > { %v978_v39 = vpop.f32.mrb[8].mxu0  ;;  %v1049_v51 = vpop.f32.mrb[8].mxu1 }
 0x514   : > { %v1054_v52 = vadd.f32 %v1675_v36, %v978_v39  ;;  %v980_v54 = vpop.f32.mrb[9].mxu0  ;;  %v1051_v55 = vpop.f32.mrb[9].mxu1  ;;  %v1056_v3 = vadd.f32 %v1677_v0, %v1049_v51  ;;  %v1683_v36 = vld [vmem:[%s2396_s15 + $0xa8] sm:$0xff] }
 0x515   : > { %v1055_v57 = vadd.f32 %v1676_v37, %v980_v54  ;;  %v1057_v62 = vadd.f32 %v1678_v61, %v1051_v55 }
 0x516   : > { %v1679_v58 = vmul.f32 -1.442695, %v1054_v52 }
 0x517   : > { %v1680_v60 = vmul.f32 -1.442695, %v1055_v57  ;;  %v1681_v2 = vmul.f32 -1.442695, %v1057_v62  ;;  %v1684_v62 = vld [vmem:[%s2396_s15 + $0xb0] sm:$0xff] }
 0x518   : > { %2293 = vpow2.f32 %v1679_v58 }
 0x519   : > { %2295 = vpow2.f32 %v1680_v60  ;;  %v1685_v60 = vld [vmem:[%s2396_s15 + $0xb8] sm:$0xff] }
 0x51a   : > { %2297 = vpow2.f32 %v1681_v2 }
 0x51b   : > { %2299 = vtanh.f32 %v1056_v3 }
 0x522   : > { %v2294_v5 = vpop.eup %2293 }
 0x523   : > { %v2296_v6 = vpop.eup %2295  ;;  %v1061_v12 = vadd.f32 1.0, %v2294_v5 }
 0x524   : > { %v1067_v13 = vadd.f32 1.0, %v2296_v6  ;;  %v2298_v14 = vpop.eup %2297 }
 0x525   : > { %2301 = vrcp.f32 %v1061_v12  ;;  %v2300_v17 = vpop.eup %2299  ;;  %v1074_v24 = vadd.f32 1.0, %v2298_v14 }
 0x526   : > { %2303 = vrcp.f32 %v1067_v13 }
 0x527   : > { %2305 = vrcp.f32 %v1074_v24 }
 0x52f   : > { %v2302_v20 = vpop.eup %2301 }
 0x530   : > { %v2304_v21 = vpop.eup %2303  ;;  %v1078_v22 = vmul.f32 %v2302_v20, %v2300_v17 }
 0x531   : > { %v1077_v29 = vmul.f32 %v2304_v21, %v2861_v35  ;;  %v2306_v44 = vpop.eup %2305  ;;  %v1682_v35 = vld [vmem:[%s2396_s15 + $0xa0] sm:$0xff] }
 0x533   : > { %v2903_v30 = vadd.f32 %v1078_v22, %v1077_v29 }
 0x535   : > { %2307 = vtanh.f32 %v2903_v30 }
 0x53f   : > { %v2308_v45 = vpop.eup %2307 }
 0x540   : > { %v1081_v48 = vmul.f32 %v2308_v45, %v2306_v44 }
 0x542   : > { %1152 = vmatmul.mubr.f32.vlgmr.msra.gmra.mrb[10].mxu0 %v1081_v48  ;;  %1223 = vmatmul.mubr.f32.vlgmr.msra.gmra.mrb[10].mxu1 %v1081_v48 }
 0x543   : > { %2094 = vmatpush1.bf16.msra.mxu0 %v2427_v9  ;;  %2126 = vmatpush1.bf16.msra.mxu1 %v2476_v26 }
 0x544   : > { %2096 = vmatprep.subr.bf16.mxu0 %v2429_v10  ;;  %2128 = vmatprep.subr.bf16.mxu1 %v2501_v34 }
 0x545   : > { %1326 = vmatprep.mubr.f32.mxu0 %v2366_v8  ;;  %1397 = vmatprep.mubr.f32.mxu1 %v2366_v8 }
 0x547   : > { %2098 = vmatpush1.bf16.msra.mxu0 %v2445_v15  ;;  %2130 = vmatpush1.bf16.msra.mxu1 %v2512_v38 }
 0x548   : > { %2100 = vmatprep.subr.bf16.mxu0 %v2454_v18  ;;  %2132 = vmatprep.subr.bf16.mxu1 %v2536_v46 }
 0x54b   : > { %2102 = vmatpush1.bf16.msra.mxu0 %v2479_v27  ;;  %2134 = vmatpush1.bf16.msra.mxu1 %v2545_v49 }
 0x54c   : > { %2104 = vmatprep.subr.bf16.mxu0 %v2492_v31  ;;  %2136 = vmatprep.subr.bf16.mxu1 %v2557_v53 }
 0x54f   : > { %2106 = vmatpush1.bf16.msra.mxu0 %v2528_v43  ;;  %2138 = vmatpush1.bf16.msra.mxu1 %v2587_v63 }
 0x550   : > { %2108 = vmatprep.subr.bf16.mxu0 %v2539_v47  ;;  %2140 = vmatprep.subr.bf16.mxu1 %v2593_v1 }
 0x553   : > { %2110 = vmatpush1.bf16.msra.mxu0 %v2566_v56  ;;  %2142 = vmatpush1.bf16.msra.mxu1 %v2623_v16 }
 0x554   : > { %2112 = vmatprep.subr.bf16.mxu0 %v2575_v59  ;;  %2144 = vmatprep.subr.bf16.mxu1 %v2629_v19 }
 0x557   : > { %2114 = vmatpush1.bf16.msra.mxu0 %v2608_v7  ;;  %2146 = vmatpush1.bf16.msra.mxu1 %v2656_v32 }
 0x558   : > { %2116 = vmatprep.subr.bf16.mxu0 %v2611_v11  ;;  %2148 = vmatprep.subr.bf16.mxu1 %v2659_v33 }
 0x55b   : > { %2118 = vmatpush1.bf16.msra.mxu0 %v2644_v25  ;;  %2150 = vmatpush1.bf16.msra.mxu1 %v2678_v41 }
 0x55c   : > { %2120 = vmatprep.subr.bf16.mxu0 %v2647_v28  ;;  %2152 = vmatprep.subr.bf16.mxu1 %v2681_v42 }
 0x55f   : > { %2122 = vmatpush1.bf16.msra.mxu0 %v2674_v40  ;;  %2154 = vmatpush1.bf16.msra.mxu1 %v2691_v50 }
 0x560   : > { %2156 = vmatprep.subr.bf16.mxu0 %v2414_v4  ;;  %2188 = vmatprep.subr.bf16.mxu1 %v2468_v23 }
 0x615   : > { %v1153_v37 = vpop.f32.mrb[10].mxu0  ;;  %v1224_v39 = vpop.f32.mrb[10].mxu1 }
 0x616   : > { %v1229_v51 = vadd.f32 %v1682_v35, %v1153_v37  ;;  %v1155_v52 = vpop.f32.mrb[11].mxu0  ;;  %v1226_v54 = vpop.f32.mrb[11].mxu1  ;;  %v1231_v4 = vadd.f32 %v1684_v62, %v1224_v39 }
 0x617   : > { %v1230_v55 = vadd.f32 %v1683_v36, %v1155_v52  ;;  %v1232_v61 = vadd.f32 %v1685_v60, %v1226_v54  ;;  %v1699_v54 = vld [vmem:[%s2396_s15 + $0xf8] sm:$0xff] }
 0x618   : > { %v1686_v57 = vmul.f32 -1.442695, %v1229_v51 }
 0x619   : > { %v1687_v58 = vmul.f32 -1.442695, %v1230_v55  ;;  %v1688_v0 = vmul.f32 -1.442695, %v1232_v61 }
 0x61a   : > { %2309 = vpow2.f32 %v1686_v57  ;;  %v1698_v57 = vld [vmem:[%s2396_s15 + $0xf0] sm:$0xff] }
 0x61b   : > { %2311 = vpow2.f32 %v1687_v58 }
 0x61c   : > { %2313 = vpow2.f32 %v1688_v0 }
 0x61d   : > { %2315 = vtanh.f32 %v1231_v4 }
 0x624   : > { %v2310_v2 = vpop.eup %2309 }
 0x625   : > { %v2312_v3 = vpop.eup %2311  ;;  %v1236_v23 = vadd.f32 1.0, %v2310_v2 }
 0x626   : > { %v1242_v5 = vadd.f32 1.0, %v2312_v3  ;;  %v2314_v6 = vpop.eup %2313 }
 0x627   : > { %2317 = vrcp.f32 %v1236_v23  ;;  %v2316_v12 = vpop.eup %2315  ;;  %v1249_v20 = vadd.f32 1.0, %v2314_v6 }
 0x628   : > { %2319 = vrcp.f32 %v1242_v5 }
 0x629   : > { %2321 = vrcp.f32 %v1249_v20 }
 0x631   : > { %v2318_v13 = vpop.eup %2317 }
 0x632   : > { %v2320_v14 = vpop.eup %2319  ;;  %v1253_v17 = vmul.f32 %v2318_v13, %v2316_v12 }
 0x633   : > { %v1252_v21 = vmul.f32 %v2320_v14, %v2903_v30  ;;  %v2322_v24 = vpop.eup %2321  ;;  %v1697_v30 = vld [vmem:[%s2396_s15 + $0xe8] sm:$0xff] }
 0x635   : > { %v2945_v22 = vadd.f32 %v1253_v17, %v1252_v21 }
 0x637   : > { %2323 = vtanh.f32 %v2945_v22 }
 0x641   : > { %v2324_v29 = vpop.eup %2323 }
 0x642   : > { %v1256_v44 = vmul.f32 %v2324_v29, %v2322_v24 }
 0x644   : > { %1327 = vmatmul.mubr.f32.vlgmr.msra.gmra.mrb[12].mxu0 %v1256_v44  ;;  %1398 = vmatmul.mubr.f32.vlgmr.msra.gmra.mrb[12].mxu1 %v1256_v44 }
 0x645   : > { %2158 = vmatpush1.bf16.msra.mxu0 %v2427_v9  ;;  %2190 = vmatpush1.bf16.msra.mxu1 %v2476_v26  ;;  %v1690_v9 = vld [vmem:[%s2396_s15 + $0xc8] sm:$0xff] }
 0x646   : > { %2160 = vmatprep.subr.bf16.mxu0 %v2429_v10  ;;  %2192 = vmatprep.subr.bf16.mxu1 %v2501_v34 }
 0x647   : > { %1501 = vmatprep.mubr.f32.mxu0 %v2366_v8  ;;  %1572 = vmatprep.mubr.f32.mxu1 %v2366_v8  ;;  %v1689_v8 = vld [vmem:[%s2396_s15 + $0xc0] sm:$0xff] }
 0x649   : > { %2162 = vmatpush1.bf16.msra.mxu0 %v2445_v15  ;;  %2194 = vmatpush1.bf16.msra.mxu1 %v2512_v38 }
 0x64a   : > { %2164 = vmatprep.subr.bf16.mxu0 %v2454_v18  ;;  %2196 = vmatprep.subr.bf16.mxu1 %v2536_v46 }
 0x64d   : > { %2166 = vmatpush1.bf16.msra.mxu0 %v2479_v27  ;;  %2198 = vmatpush1.bf16.msra.mxu1 %v2545_v49 }
 0x64e   : > { %2168 = vmatprep.subr.bf16.mxu0 %v2492_v31  ;;  %2200 = vmatprep.subr.bf16.mxu1 %v2557_v53 }
 0x651   : > { %2170 = vmatpush1.bf16.msra.mxu0 %v2528_v43  ;;  %2202 = vmatpush1.bf16.msra.mxu1 %v2587_v63  ;;  %v1692_v43 = vld [vmem:[%s2396_s15 + $0xd8] sm:$0xff] }
 0x652   : > { %2172 = vmatprep.subr.bf16.mxu0 %v2539_v47  ;;  %2204 = vmatprep.subr.bf16.mxu1 %v2593_v1  ;;  %v1691_v47 = vld [vmem:[%s2396_s15 + $0xd0] sm:$0xff] }
 0x655   : > { %2174 = vmatpush1.bf16.msra.mxu0 %v2566_v56  ;;  %2206 = vmatpush1.bf16.msra.mxu1 %v2623_v16 }
 0x656   : > { %2176 = vmatprep.subr.bf16.mxu0 %v2575_v59  ;;  %2208 = vmatprep.subr.bf16.mxu1 %v2629_v19 }
 0x659   : > { %2178 = vmatpush1.bf16.msra.mxu0 %v2608_v7  ;;  %2210 = vmatpush1.bf16.msra.mxu1 %v2656_v32 }
 0x65a   : > { %2180 = vmatprep.subr.bf16.mxu0 %v2611_v11  ;;  %2212 = vmatprep.subr.bf16.mxu1 %v2659_v33 }
 0x65d   : > { %2182 = vmatpush1.bf16.msra.mxu0 %v2644_v25  ;;  %2214 = vmatpush1.bf16.msra.mxu1 %v2678_v41 }
 0x65e   : > { %2184 = vmatprep.subr.bf16.mxu0 %v2647_v28  ;;  %2216 = vmatprep.subr.bf16.mxu1 %v2681_v42 }
 0x661   : > { %2186 = vmatpush1.bf16.msra.mxu0 %v2674_v40  ;;  %2218 = vmatpush1.bf16.msra.mxu1 %v2691_v50  ;;  %v1696_v50 = vld [vmem:[%s2396_s15 + $0xe0] sm:$0xff] }
 0x717   : > { %v1328_v10 = vpop.f32.mrb[12].mxu0  ;;  %v1399_v15 = vpop.f32.mrb[12].mxu1 }
 0x718   : > { %v1404_v18 = vadd.f32 %v1689_v8, %v1328_v10  ;;  %v1330_v26 = vpop.f32.mrb[13].mxu0  ;;  %v1401_v27 = vpop.f32.mrb[13].mxu1  ;;  %v1406_v53 = vadd.f32 %v1691_v47, %v1399_v15 }
 0x719   : > { %v1405_v31 = vadd.f32 %v1690_v9, %v1330_v26  ;;  %v1407_v46 = vadd.f32 %v1692_v43, %v1401_v27 }
 0x71a   : > { %v1693_v34 = vmul.f32 -1.442695, %v1404_v18 }
 0x71b   : > { %v1694_v38 = vmul.f32 -1.442695, %v1405_v31  ;;  %v1695_v49 = vmul.f32 -1.442695, %v1407_v46 }
 0x71c   : > { %2325 = vpow2.f32 %v1693_v34 }
 0x71d   : > { %2327 = vpow2.f32 %v1694_v38 }
 0x71e   : > { %2329 = vpow2.f32 %v1695_v49 }
 0x71f   : > { %2331 = vtanh.f32 %v1406_v53 }
 0x726   : > { %v2326_v56 = vpop.eup %2325 }
 0x727   : > { %v2328_v59 = vpop.eup %2327  ;;  %v1411_v63 = vadd.f32 1.0, %v2326_v56 }
 0x728   : > { %v1417_v1 = vadd.f32 1.0, %v2328_v59  ;;  %v2330_v7 = vpop.eup %2329 }
 0x729   : > { %2333 = vrcp.f32 %v1411_v63  ;;  %v2332_v11 = vpop.eup %2331  ;;  %v1424_v28 = vadd.f32 1.0, %v2330_v7 }
 0x72a   : > { %2335 = vrcp.f32 %v1417_v1 }
 0x72b   : > { %2337 = vrcp.f32 %v1424_v28 }
 0x733   : > { %v2334_v16 = vpop.eup %2333 }
 0x734   : > { %v2336_v19 = vpop.eup %2335  ;;  %v1428_v25 = vmul.f32 %v2334_v16, %v2332_v11 }
 0x735   : > { %v1427_v32 = vmul.f32 %v2336_v19, %v2945_v22  ;;  %v2338_v40 = vpop.eup %2337 }
 0x737   : > { %v1429_v33 = vadd.f32 %v1428_v25, %v1427_v32 }
 0x739   : > { %2339 = vtanh.f32 %v1429_v33 }
 0x743   : > { %v2340_v41 = vpop.eup %2339 }
 0x744   : > { %v1431_v42 = vmul.f32 %v2340_v41, %v2338_v40 }
 0x746   : > { %1502 = vmatmul.mubr.f32.vlgmr.msra.gmra.mrb[14].mxu0 %v1431_v42  ;;  %1573 = vmatmul.mubr.f32.vlgmr.msra.gmra.mrb[14].mxu1 %v1431_v42 }
 0x819   : > { %v1503_v45 = vpop.f32.mrb[14].mxu0  ;;  %v1574_v48 = vpop.f32.mrb[14].mxu1 }
 0x81a   : > { %v1579_v35 = vadd.f32 %v1696_v50, %v1503_v45  ;;  %v1505_v36 = vpop.f32.mrb[15].mxu0  ;;  %v1576_v37 = vpop.f32.mrb[15].mxu1  ;;  %v1581_v60 = vadd.f32 %v1698_v57, %v1574_v48 }
 0x81b   : > { %v1580_v39 = vadd.f32 %v1697_v30, %v1505_v36  ;;  %v1582_v55 = vadd.f32 %v1699_v54, %v1576_v37 }
 0x81c   : > { %v1700_v51 = vmul.f32 -1.442695, %v1579_v35 }
 0x81d   : > { %v1701_v52 = vmul.f32 -1.442695, %v1580_v39  ;;  %v1702_v58 = vmul.f32 -1.442695, %v1582_v55 }
 0x81e   : > { %2341 = vpow2.f32 %v1700_v51 }
 0x81f   : > { %2343 = vpow2.f32 %v1701_v52 }
 0x820   : > { %2345 = vpow2.f32 %v1702_v58 }
 0x821   : > { %2347 = vtanh.f32 %v1581_v60 }
 0x828   : > { %v2342_v61 = vpop.eup %2341 }
 0x829   : > { %v2344_v62 = vpop.eup %2343  ;;  %v1586_v0 = vadd.f32 1.0, %v2342_v61 }
 0x82a   : > { %v1592_v4 = vadd.f32 1.0, %v2344_v62  ;;  %v2346_v2 = vpop.eup %2345 }
 0x82b   : > { %2349 = vrcp.f32 %v1586_v0  ;;  %v2348_v3 = vpop.eup %2347  ;;  %v1599_v12 = vadd.f32 1.0, %v2346_v2 }
 0x82c   : > { %2351 = vrcp.f32 %v1592_v4 }
 0x82d   : > { %2353 = vrcp.f32 %v1599_v12 }
 0x835   : > { %v2350_v23 = vpop.eup %2349 }
 0x836   : > { %v2352_v5 = vpop.eup %2351  ;;  %v1603_v6 = vmul.f32 %v2350_v23, %v2348_v3 }
 0x837   : > { %v1602_v13 = vmul.f32 %v2352_v5, %v1429_v33  ;;  %v2354_v17 = vpop.eup %2353 }
 0x839   : > { %v1604_v14 = vadd.f32 %v1603_v6, %v1602_v13 }
 0x83b   : > { %2355 = vtanh.f32 %v1604_v14  ;;  %1608 = vst [vmem:[#allocation3] sm:$0xff] %v1604_v14  ;;  %1614 = vst [vmem:[%s3001_s2 + $0x8] sm:$0xff] (!%p1703_p5), %v1604_v14 }
 0x842   : > { %1612 = sbr.rel (%p1703_p5) target bundleno = 2121 (0x849), region = 36 }
 0x845   : > { %v2356_v20 = vpop.eup %2355 }
 0x846   : > { %v1606_v21 = vmul.f32 %v2356_v20, %v2354_v17 }
 0x848   : > { %1607 = vst [vmem:[#allocation2] sm:$0xff] %v1606_v21  ;;  %1613 = vst [vmem:[%s3001_s2] sm:$0xff] (!%p1703_p5), %v1606_v21 }
 0x849 PF: > { %s12_s9 = sadd.s32 1, %s2363_s9  }
 0x84a   : > { %p9_p6 = scmp.ge.s32.totalorder %s12_s9, 4  }
 0x84c   :  { %11 = sbr.rel (!%p9_p6) target bundleno = 1 (0x1), region = 69 }

// kernel: video_encoder_forward.2
= control target key start
LH: loop header
LB: loop body
LE: loop exit
PB: predicated region body
PF: predicated region fallthrough
CT: control target
= control target key end

     0   :  { %vm45_vm0 = vcmask 130048   ;;  %s1476_s1 = inlined_call_operand.vmem [shape: f32[16,128], index: 1, kind: input, shape index: {}]   ;;  %s1477_s0 = inlined_call_operand.vmem [shape: f32[128,16], index: 0, kind: input, shape index: {}]   ;;  %s1478_s3 = inlined_call_operand.vmem [shape: f32[128,512], index: 3, kind: input, shape index: {}]   ;;  %s1479_s2 = inlined_call_operand.vmem [shape: f32[1,128], index: 2, kind: input, shape index: {}]   ;;  %s1480_s4 = inlined_call_operand.vmem [shape: f32[1,512], index: 4, kind: input, shape index: {}]   ;;  %s1481_s5 = inlined_call_operand.vmem [shape: f32[128,512], index: 5, kind: output, shape index: {}]  }
   0x1   :  { %v36_v0 = vld [vmem:[%s1476_s1] sm:$0xff]  ;;  %v37_v1 = vld [vmem:[%s1476_s1 + $0x8] sm:$0xff]  ;;  %v22_v5 = vld [vmem:[%s1477_s0 + $0x10] sm:$0xff] }
   0x2   :  { %v20_v2 = vld [vmem:[%s1477_s0] sm:$0xff]  ;;  %v794_v3 = vpack.c.bf16 %v37_v1, %v36_v0  ;;  %v21_v4 = vld [vmem:[%s1477_s0 + $0x8] sm:$0xff]  ;;  %v23_v6 = vld [vmem:[%s1477_s0 + $0x18] sm:$0xff] }
   0x3   :  { %770 = vmatprep.mubr.msk.f32.mxu0 %vm45_vm0, %v20_v2  ;;  %v258_v7 = vld [vmem:[%s1478_s3 + $0x18] sm:$0xff]  ;;  %v256_v9 = vld [vmem:[%s1478_s3 + $0x8] sm:$0xff]  ;;  %v24_v10 = vld [vmem:[%s1477_s0 + $0x20] sm:$0xff] }
   0x4   :  { %795 = vmatprep.subr.bf16.mxu0 %v794_v3  ;;  %v262_v8 = vld [vmem:[%s1478_s3 + $0x38] sm:$0xff]  ;;  %v260_v12 = vld [vmem:[%s1478_s3 + $0x28] sm:$0xff]  ;;  %v257_v13 = vld [vmem:[%s1478_s3 + $0x10] sm:$0xff] }
   0x5   :  { %797 = vmatpush3.bf16.msra.mxu0 %v794_v3  ;;  %v830_v11 = vpack.c.bf16 %v262_v8, %v258_v7  ;;  %v261_v14 = vld [vmem:[%s1478_s3 + $0x30] sm:$0xff]  ;;  %v798_v15 = vpack.c.bf16 %v260_v12, %v256_v9  ;;  %v255_v17 = vld [vmem:[%s1478_s3] sm:$0xff]  ;;  %v266_v19 = vld [vmem:[%s1478_s3 + $0x58] sm:$0xff] }
   0x6   :  { %v832_v16 = vpack.c.bf16 %v261_v14, %v257_v13  ;;  %v259_v18 = vld [vmem:[%s1478_s3 + $0x20] sm:$0xff]  ;;  %v270_v21 = vld [vmem:[%s1478_s3 + $0x78] sm:$0xff]  ;;  %v264_v22 = vld [vmem:[%s1478_s3 + $0x48] sm:$0xff] }
   0x7   :  { %831 = vmatprep.subr.bf16.mxu0 %v830_v11  ;;  %v800_v20 = vpack.c.bf16 %v259_v18, %v255_v17  ;;  %v268_v23 = vld [vmem:[%s1478_s3 + $0x68] sm:$0xff]  ;;  %799 = vmatprep.subr.bf16.mxu1 %v798_v15  ;;  %v834_v25 = vpack.c.bf16 %v270_v21, %v266_v19  ;;  %v265_v27 = vld [vmem:[%s1478_s3 + $0x50] sm:$0xff]  ;;  %v263_v29 = vld [vmem:[%s1478_s3 + $0x40] sm:$0xff] }
   0x8   :  { %771 = vmatmul.mubr.msk.f32.vlgmr.msra.gmra.mrb[0].mxu0 %vm45_vm0, %v21_v4  ;;  %v25_v24 = vld [vmem:[%s1477_s0 + $0x28] sm:$0xff]  ;;  %v802_v26 = vpack.c.bf16 %v268_v23, %v264_v22  ;;  %v269_v28 = vld [vmem:[%s1478_s3 + $0x70] sm:$0xff]  ;;  %v267_v32 = vld [vmem:[%s1478_s3 + $0x60] sm:$0xff] }
   0x9   :  { %773 = vmatprep.mubr.msk.f32.mxu0 %vm45_vm0, %v22_v5  ;;  %833 = vmatpush1.bf16.msra.mxu0 %v832_v16  ;;  %v26_v30 = vld [vmem:[%s1477_s0 + $0x30] sm:$0xff]  ;;  %v836_v31 = vpack.c.bf16 %v269_v28, %v265_v27  ;;  %v274_v33 = vld [vmem:[%s1478_s3 + $0x98] sm:$0xff]  ;;  %v804_v35 = vpack.c.bf16 %v267_v32, %v263_v29  ;;  %v272_v37 = vld [vmem:[%s1478_s3 + $0x88] sm:$0xff] }
   0xa   :  { %801 = vmatpush1.bf16.msra.mxu1 %v800_v20  ;;  %v278_v34 = vld [vmem:[%s1478_s3 + $0xb8] sm:$0xff]  ;;  %835 = vmatprep.subr.bf16.mxu0 %v834_v25  ;;  %v276_v38 = vld [vmem:[%s1478_s3 + $0xa8] sm:$0xff]  ;;  %v273_v39 = vld [vmem:[%s1478_s3 + $0x90] sm:$0xff] }
   0xb   :  { %v838_v36 = vpack.c.bf16 %v278_v34, %v274_v33  ;;  %803 = vmatprep.subr.bf16.mxu1 %v802_v26  ;;  %v806_v40 = vpack.c.bf16 %v276_v38, %v272_v37  ;;  %v277_v41 = vld [vmem:[%s1478_s3 + $0xb0] sm:$0xff]  ;;  %v271_v42 = vld [vmem:[%s1478_s3 + $0x80] sm:$0xff]  ;;  %v282_v45 = vld [vmem:[%s1478_s3 + $0xd8] sm:$0xff] }
   0xc   :  { %774 = vmatmul.mubr.msk.f32.gmra.mrb[2].mxu0 %vm45_vm0, %v23_v6  ;;  %v275_v43 = vld [vmem:[%s1478_s3 + $0xa0] sm:$0xff]  ;;  %v840_v44 = vpack.c.bf16 %v277_v41, %v273_v39  ;;  %v286_v46 = vld [vmem:[%s1478_s3 + $0xf8] sm:$0xff]  ;;  %v280_v47 = vld [vmem:[%s1478_s3 + $0xc8] sm:$0xff] }
   0xd   :  { %776 = vmatprep.mubr.msk.f32.mxu0 %vm45_vm0, %v24_v10  ;;  %837 = vmatpush1.bf16.msra.mxu0 %v836_v31  ;;  %v808_v48 = vpack.c.bf16 %v275_v43, %v271_v42  ;;  %v284_v49 = vld [vmem:[%s1478_s3 + $0xe8] sm:$0xff]  ;;  %v281_v50 = vld [vmem:[%s1478_s3 + $0xd0] sm:$0xff]  ;;  %v27_v52 = vld [vmem:[%s1477_s0 + $0x38] sm:$0xff]  ;;  %v842_v53 = vpack.c.bf16 %v286_v46, %v282_v45 }
   0xe   :  { %805 = vmatpush1.bf16.msra.mxu1 %v804_v35  ;;  %v285_v51 = vld [vmem:[%s1478_s3 + $0xf0] sm:$0xff]  ;;  %839 = vmatprep.subr.bf16.mxu0 %v838_v36  ;;  %v279_v54 = vld [vmem:[%s1478_s3 + $0xc0] sm:$0xff]  ;;  %v810_v57 = vpack.c.bf16 %v284_v49, %v280_v47  ;;  %v290_v58 = vld [vmem:[%s1478_s3 + $0x118] sm:$0xff] }
   0xf   :  { %v283_v55 = vld [vmem:[%s1478_s3 + $0xe0] sm:$0xff]  ;;  %807 = vmatprep.subr.bf16.mxu1 %v806_v40  ;;  %v294_v59 = vld [vmem:[%s1478_s3 + $0x138] sm:$0xff]  ;;  %v844_v60 = vpack.c.bf16 %v285_v51, %v281_v50  ;;  %v288_v61 = vld [vmem:[%s1478_s3 + $0x108] sm:$0xff]  ;;  %v863_v51 = vmov 0.0  }
  0x10   :  { %777 = vmatmul.mubr.msk.f32.gmra.mrb[4].mxu0 %vm45_vm0, %v25_v24  ;;  %v28_v56 = vld [vmem:[%s1477_s0 + $0x40] sm:$0xff]  ;;  %v292_v62 = vld [vmem:[%s1478_s3 + $0x128] sm:$0xff]  ;;  %v812_v63 = vpack.c.bf16 %v283_v55, %v279_v54  ;;  %v289_v0 = vld [vmem:[%s1478_s3 + $0x110] sm:$0xff]  ;;  %v846_v3 = vpack.c.bf16 %v294_v59, %v290_v58  ;;  %405 = vmatprep.mubr.f32.mxu1 %v863_v51 }
  0x11   :  { %779 = vmatprep.mubr.msk.f32.mxu0 %vm45_vm0, %v26_v30  ;;  %841 = vmatpush1.bf16.msra.mxu0 %v840_v44  ;;  %v293_v1 = vld [vmem:[%s1478_s3 + $0x130] sm:$0xff]  ;;  %v29_v2 = vld [vmem:[%s1477_s0 + $0x48] sm:$0xff]  ;;  %v287_v4 = vld [vmem:[%s1478_s3 + $0x100] sm:$0xff]  ;;  %v814_v7 = vpack.c.bf16 %v292_v62, %v288_v61 }
  0x12   :  { %809 = vmatpush1.bf16.msra.mxu1 %v808_v48  ;;  %843 = vmatprep.subr.bf16.mxu0 %v842_v53  ;;  %v291_v5 = vld [vmem:[%s1478_s3 + $0x120] sm:$0xff]  ;;  %v30_v6 = vld [vmem:[%s1477_s0 + $0x50] sm:$0xff]  ;;  %v298_v8 = vld [vmem:[%s1478_s3 + $0x158] sm:$0xff]  ;;  %v848_v10 = vpack.c.bf16 %v293_v1, %v289_v0 }
  0x13   :  { %811 = vmatprep.subr.bf16.mxu1 %v810_v57  ;;  %v302_v9 = vld [vmem:[%s1478_s3 + $0x178] sm:$0xff]  ;;  %v296_v11 = vld [vmem:[%s1478_s3 + $0x148] sm:$0xff]  ;;  %v816_v13 = vpack.c.bf16 %v291_v5, %v287_v4  ;;  %v297_v14 = vld [vmem:[%s1478_s3 + $0x150] sm:$0xff] }
  0x14   :  { %780 = vmatmul.mubr.msk.f32.gmra.mrb[6].mxu0 %vm45_vm0, %v27_v52  ;;  %v300_v12 = vld [vmem:[%s1478_s3 + $0x168] sm:$0xff]  ;;  %v301_v15 = vld [vmem:[%s1478_s3 + $0x170] sm:$0xff]  ;;  %v31_v16 = vld [vmem:[%s1477_s0 + $0x58] sm:$0xff]  ;;  %v850_v17 = vpack.c.bf16 %v302_v9, %v298_v8 }
  0x15   :  { %782 = vmatprep.mubr.msk.f32.mxu0 %vm45_vm0, %v28_v56  ;;  %845 = vmatpush1.bf16.msra.mxu0 %v844_v60  ;;  %v295_v18 = vld [vmem:[%s1478_s3 + $0x140] sm:$0xff]  ;;  %v818_v21 = vpack.c.bf16 %v300_v12, %v296_v11  ;;  %v306_v22 = vld [vmem:[%s1478_s3 + $0x198] sm:$0xff]  ;;  %v852_v24 = vpack.c.bf16 %v301_v15, %v297_v14  ;;  %v304_v25 = vld [vmem:[%s1478_s3 + $0x188] sm:$0xff] }
  0x16   :  { %813 = vmatpush1.bf16.msra.mxu1 %v812_v63  ;;  %847 = vmatprep.subr.bf16.mxu0 %v846_v3  ;;  %v299_v19 = vld [vmem:[%s1478_s3 + $0x160] sm:$0xff]  ;;  %v310_v23 = vld [vmem:[%s1478_s3 + $0x1b8] sm:$0xff]  ;;  %v308_v26 = vld [vmem:[%s1478_s3 + $0x1a8] sm:$0xff] }
  0x17   :  { %v32_v20 = vld [vmem:[%s1477_s0 + $0x60] sm:$0xff]  ;;  %815 = vmatprep.subr.bf16.mxu1 %v814_v7  ;;  %v820_v27 = vpack.c.bf16 %v299_v19, %v295_v18  ;;  %v305_v28 = vld [vmem:[%s1478_s3 + $0x190] sm:$0xff]  ;;  %v33_v30 = vld [vmem:[%s1477_s0 + $0x68] sm:$0xff]  ;;  %v854_v31 = vpack.c.bf16 %v310_v23, %v306_v22  ;;  %v822_v35 = vpack.c.bf16 %v308_v26, %v304_v25 }
  0x18   :  { %783 = vmatmul.mubr.msk.f32.gmra.mrb[8].mxu0 %vm45_vm0, %v29_v2  ;;  %v309_v29 = vld [vmem:[%s1478_s3 + $0x1b0] sm:$0xff]  ;;  %v303_v32 = vld [vmem:[%s1478_s3 + $0x180] sm:$0xff]  ;;  %v35_v38 = vld [vmem:[%s1477_s0 + $0x78] sm:$0xff] }
  0x19   :  { %785 = vmatprep.mubr.msk.f32.mxu0 %vm45_vm0, %v30_v6  ;;  %849 = vmatpush1.bf16.msra.mxu0 %v848_v10  ;;  %v307_v33 = vld [vmem:[%s1478_s3 + $0x1a0] sm:$0xff]  ;;  %v34_v34 = vld [vmem:[%s1477_s0 + $0x70] sm:$0xff]  ;;  %v856_v36 = vpack.c.bf16 %v309_v29, %v305_v28  ;;  %v314_v39 = vld [vmem:[%s1478_s3 + $0x1d8] sm:$0xff] }
  0x1a   :  { %817 = vmatpush1.bf16.msra.mxu1 %v816_v13  ;;  %851 = vmatprep.subr.bf16.mxu0 %v850_v17  ;;  %v824_v37 = vpack.c.bf16 %v307_v33, %v303_v32  ;;  %v318_v40 = vld [vmem:[%s1478_s3 + $0x1f8] sm:$0xff]  ;;  %v312_v41 = vld [vmem:[%s1478_s3 + $0x1c8] sm:$0xff]  ;;  %v313_v44 = vld [vmem:[%s1478_s3 + $0x1d0] sm:$0xff] }
  0x1b   :  { %819 = vmatprep.subr.bf16.mxu1 %v818_v21  ;;  %v858_v42 = vpack.c.bf16 %v318_v40, %v314_v39  ;;  %v316_v43 = vld [vmem:[%s1478_s3 + $0x1e8] sm:$0xff]  ;;  %v317_v46 = vld [vmem:[%s1478_s3 + $0x1f0] sm:$0xff]  ;;  %v311_v47 = vld [vmem:[%s1478_s3 + $0x1c0] sm:$0xff] }
  0x1c   :  { %786 = vmatmul.mubr.msk.f32.gmra.mrb[10].mxu0 %vm45_vm0, %v31_v16  ;;  %v826_v45 = vpack.c.bf16 %v316_v43, %v312_v41  ;;  %v315_v48 = vld [vmem:[%s1478_s3 + $0x1e0] sm:$0xff]  ;;  %v860_v49 = vpack.c.bf16 %v317_v46, %v313_v44 }
  0x1d   :  { %788 = vmatprep.mubr.msk.f32.mxu0 %vm45_vm0, %v32_v20  ;;  %853 = vmatpush1.bf16.msra.mxu0 %v852_v24  ;;  %v828_v50 = vpack.c.bf16 %v315_v48, %v311_v47  ;;  %v1161_v52 = vld [vmem:[%s1479_s2] ss:$0 sm:$0xff] }
  0x1e   :  { %821 = vmatpush1.bf16.msra.mxu1 %v820_v27  ;;  %855 = vmatprep.subr.bf16.mxu0 %v854_v31  ;;  %v319_v41 = vld [vmem:[%s1480_s4] sm:$0xf] }
  0x1f   :  { %823 = vmatprep.subr.bf16.mxu1 %v822_v35 }
  0x20   :  { %789 = vmatmul.mubr.msk.f32.gmra.mrb[12].mxu0 %vm45_vm0, %v33_v30 }
  0x21   :  { %791 = vmatprep.mubr.msk.f32.mxu0 %vm45_vm0, %v34_v34  ;;  %857 = vmatpush1.bf16.msra.mxu0 %v856_v36 }
  0x22   :  { %825 = vmatpush1.bf16.msra.mxu1 %v824_v37  ;;  %859 = vmatprep.subr.bf16.mxu0 %v858_v42  ;;  %v321_v37 = vlaneseq }
  0x23   :  { %827 = vmatprep.subr.bf16.mxu1 %v826_v45 }
  0x24   :  { %792 = vmatmul.mubr.msk.f32.gmra.mrb[14].mxu0 %vm45_vm0, %v35_v38  ;;  %v322_v38 = vshrl.u32 %v321_v37, 7 }
  0x25   :  { %861 = vmatpush1.bf16.msra.mxu0 %v860_v49  ;;  %566 = vmatprep.mubr.f32.mxu0 %v863_v51 }
  0x26   :  { %829 = vmatpush1.bf16.msra.mxu1 %v828_v50  ;;  %v323_v39 = vsub.s32 0, %v322_v38  ;;  %v331_v40 = vsub.s32 2, %v322_v38  ;;  %v327_v42 = vsub.s32 1, %v322_v38  ;;  %v335_v43 = vsub.s32 3, %v322_v38 }
  0x28   :  { %v1212_v44 = vrot.slane %v319_v41, %v323_v39  ;;  %v1214_v45 = vrot.slane %v319_v41, %v331_v40  ;;  %v1216_v46 = vrot.slane %v319_v41, %v327_v42  ;;  %v1218_v47 = vrot.slane %v319_v41, %v335_v43 }
  0xdb   :  { %v772_v53 = vpop.f32.mrb[0].mxu0 }
  0xdc   :  { %v160_v54 = vpop.f32.mrb[1].mxu0  ;;  %v166_v56 = vadd.f32 %v772_v53, %v1161_v52 }
  0xdd   :  { %v161_v55 = vadd.f32 %v1161_v52, %v160_v54 }
  0xde   :  { %v240_v61 = vmax.f32 %v166_v56, 0.0 }
  0xdf   :  { %v239_v57 = vmax.f32 %v161_v55, 0.0  ;;  %v775_v58 = vpop.f32.mrb[2].mxu0 }
  0xe0   :  { %v170_v59 = vpop.f32.mrb[3].mxu0  ;;  %v176_v1 = vadd.f32 %v775_v58, %v1161_v52 }
  0xe1   :  { %406 = vmatmul.mubr.f32.vlgmr.msra.gmra.mrb[0].mxu1 %v239_v57  ;;  %567 = vmatmul.mubr.f32.vlgmr.msra.gmra.mrb[16].mxu0 %v239_v57  ;;  %v171_v60 = vadd.f32 %v1161_v52, %v170_v59 }
  0xe2   :  { %411 = vmatprep.mubr.f32.mxu1 %v863_v51  ;;  %572 = vmatprep.mubr.f32.mxu0 %v863_v51  ;;  %v242_v5 = vmax.f32 %v176_v1, 0.0 }
  0xe3   :  { %v778_v62 = vpop.f32.mrb[4].mxu0  ;;  %v241_v0 = vmax.f32 %v171_v60, 0.0 }
  0xe4   :  { %v180_v63 = vpop.f32.mrb[5].mxu0  ;;  %v186_v9 = vadd.f32 %v778_v62, %v1161_v52 }
  0xe5   :  { %412 = vmatmul.mubr.f32.gmra.mrb[2].mxu1 %v240_v61  ;;  %573 = vmatmul.mubr.f32.gmra.mrb[18].mxu0 %v240_v61  ;;  %v181_v4 = vadd.f32 %v1161_v52, %v180_v63 }
  0xe6   :  { %417 = vmatprep.mubr.f32.mxu1 %v863_v51  ;;  %578 = vmatprep.mubr.f32.mxu0 %v863_v51  ;;  %v244_v13 = vmax.f32 %v186_v9, 0.0 }
  0xe7   :  { %v781_v2 = vpop.f32.mrb[6].mxu0  ;;  %v243_v8 = vmax.f32 %v181_v4, 0.0 }
  0xe8   :  { %v190_v3 = vpop.f32.mrb[7].mxu0  ;;  %v196_v17 = vadd.f32 %v781_v2, %v1161_v52 }
  0xe9   :  { %418 = vmatmul.mubr.f32.gmra.mrb[4].mxu1 %v241_v0  ;;  %579 = vmatmul.mubr.f32.gmra.mrb[20].mxu0 %v241_v0  ;;  %v191_v12 = vadd.f32 %v1161_v52, %v190_v3 }
  0xea   :  { %423 = vmatprep.mubr.f32.mxu1 %v863_v51  ;;  %584 = vmatprep.mubr.f32.mxu0 %v863_v51  ;;  %v246_v21 = vmax.f32 %v196_v17, 0.0 }
  0xeb   :  { %v784_v6 = vpop.f32.mrb[8].mxu0  ;;  %v245_v16 = vmax.f32 %v191_v12, 0.0 }
  0xec   :  { %v200_v7 = vpop.f32.mrb[9].mxu0  ;;  %v206_v23 = vadd.f32 %v784_v6, %v1161_v52 }
  0xed   :  { %424 = vmatmul.mubr.f32.gmra.mrb[6].mxu1 %v242_v5  ;;  %585 = vmatmul.mubr.f32.gmra.mrb[22].mxu0 %v242_v5  ;;  %v201_v20 = vadd.f32 %v1161_v52, %v200_v7 }
  0xee   :  { %429 = vmatprep.mubr.f32.mxu1 %v863_v51  ;;  %590 = vmatprep.mubr.f32.mxu0 %v863_v51  ;;  %v248_v25 = vmax.f32 %v206_v23, 0.0 }
  0xef   :  { %v787_v10 = vpop.f32.mrb[10].mxu0  ;;  %v247_v22 = vmax.f32 %v201_v20, 0.0 }
  0xf0   :  { %v210_v11 = vpop.f32.mrb[11].mxu0  ;;  %v216_v27 = vadd.f32 %v787_v10, %v1161_v52 }
  0xf1   :  { %430 = vmatmul.mubr.f32.gmra.mrb[8].mxu1 %v243_v8  ;;  %591 = vmatmul.mubr.f32.gmra.mrb[24].mxu0 %v243_v8  ;;  %v211_v24 = vadd.f32 %v1161_v52, %v210_v11 }
  0xf2   :  { %435 = vmatprep.mubr.f32.mxu1 %v863_v51  ;;  %596 = vmatprep.mubr.f32.mxu0 %v863_v51  ;;  %v250_v29 = vmax.f32 %v216_v27, 0.0 }
  0xf3   :  { %v790_v14 = vpop.f32.mrb[12].mxu0  ;;  %v249_v26 = vmax.f32 %v211_v24, 0.0 }
  0xf4   :  { %v220_v15 = vpop.f32.mrb[13].mxu0  ;;  %v226_v31 = vadd.f32 %v790_v14, %v1161_v52 }
  0xf5   :  { %436 = vmatmul.mubr.f32.gmra.mrb[10].mxu1 %v244_v13  ;;  %597 = vmatmul.mubr.f32.gmra.mrb[26].mxu0 %v244_v13  ;;  %v221_v28 = vadd.f32 %v1161_v52, %v220_v15 }
  0xf6   :  { %441 = vmatprep.mubr.f32.mxu1 %v863_v51  ;;  %602 = vmatprep.mubr.f32.mxu0 %v863_v51  ;;  %v252_v33 = vmax.f32 %v226_v31, 0.0 }
  0xf7   :  { %v793_v18 = vpop.f32.mrb[14].mxu0  ;;  %v251_v30 = vmax.f32 %v221_v28, 0.0 }
  0xf8   :  { %v230_v19 = vpop.f32.mrb[15].mxu0  ;;  %v236_v35 = vadd.f32 %v793_v18, %v1161_v52 }
  0xf9   :  { %442 = vmatmul.mubr.f32.gmra.mrb[12].mxu1 %v245_v16  ;;  %603 = vmatmul.mubr.f32.gmra.mrb[28].mxu0 %v245_v16  ;;  %v231_v32 = vadd.f32 %v1161_v52, %v230_v19 }
  0xfa   :  { %447 = vmatprep.mubr.f32.mxu1 %v863_v51  ;;  %608 = vmatprep.mubr.f32.mxu0 %v863_v51  ;;  %v254_v36 = vmax.f32 %v236_v35, 0.0 }
  0xfb   :  { %v253_v34 = vmax.f32 %v231_v32, 0.0 }
  0xfd   :  { %448 = vmatmul.mubr.f32.gmra.mrb[14].mxu1 %v246_v21  ;;  %609 = vmatmul.mubr.f32.gmra.mrb[30].mxu0 %v246_v21 }
  0xfe   :  { %453 = vmatprep.mubr.f32.mxu1 %v863_v51  ;;  %614 = vmatprep.mubr.f32.mxu0 %v863_v51 }
 0x101   :  { %454 = vmatmul.mubr.f32.gmra.mrb[16].mxu1 %v247_v22  ;;  %615 = vmatmul.mubr.f32.gmra.mrb[32].mxu0 %v247_v22 }
 0x102   :  { %459 = vmatprep.mubr.f32.mxu1 %v863_v51  ;;  %620 = vmatprep.mubr.f32.mxu0 %v863_v51 }
 0x105   :  { %460 = vmatmul.mubr.f32.gmra.mrb[18].mxu1 %v248_v25  ;;  %621 = vmatmul.mubr.f32.gmra.mrb[34].mxu0 %v248_v25 }
 0x106   :  { %465 = vmatprep.mubr.f32.mxu1 %v863_v51  ;;  %626 = vmatprep.mubr.f32.mxu0 %v863_v51 }
 0x109   :  { %466 = vmatmul.mubr.f32.gmra.mrb[20].mxu1 %v249_v26  ;;  %627 = vmatmul.mubr.f32.gmra.mrb[36].mxu0 %v249_v26 }
 0x10a   :  { %471 = vmatprep.mubr.f32.mxu1 %v863_v51  ;;  %632 = vmatprep.mubr.f32.mxu0 %v863_v51 }
 0x10d   :  { %472 = vmatmul.mubr.f32.gmra.mrb[22].mxu1 %v250_v29  ;;  %633 = vmatmul.mubr.f32.gmra.mrb[38].mxu0 %v250_v29 }
 0x10e   :  { %477 = vmatprep.mubr.f32.mxu1 %v863_v51  ;;  %638 = vmatprep.mubr.f32.mxu0 %v863_v51 }
 0x111   :  { %478 = vmatmul.mubr.f32.gmra.mrb[24].mxu1 %v251_v30  ;;  %639 = vmatmul.mubr.f32.gmra.mrb[40].mxu0 %v251_v30 }
 0x112   :  { %483 = vmatprep.mubr.f32.mxu1 %v863_v51  ;;  %644 = vmatprep.mubr.f32.mxu0 %v863_v51 }
 0x115   :  { %484 = vmatmul.mubr.f32.gmra.mrb[26].mxu1 %v252_v33  ;;  %645 = vmatmul.mubr.f32.gmra.mrb[42].mxu0 %v252_v33 }
 0x116   :  { %489 = vmatprep.mubr.f32.mxu1 %v863_v51  ;;  %650 = vmatprep.mubr.f32.mxu0 %v863_v51 }
 0x119   :  { %490 = vmatmul.mubr.f32.gmra.mrb[28].mxu1 %v253_v34  ;;  %651 = vmatmul.mubr.f32.gmra.mrb[44].mxu0 %v253_v34 }
 0x11a   :  { %495 = vmatprep.mubr.f32.mxu1 %v863_v51  ;;  %656 = vmatprep.mubr.f32.mxu0 %v863_v51 }
 0x11d   :  { %496 = vmatmul.mubr.f32.gmra.mrb[30].mxu1 %v254_v36  ;;  %657 = vmatmul.mubr.f32.gmra.mrb[46].mxu0 %v254_v36 }
 0x1b4   :  { %v407_v48 = vpop.f32.mrb[0].mxu1  ;;  %v568_v49 = vpop.f32.mrb[16].mxu0 }
 0x1b5   :  { %v408_v50 = vadd.f32 %v407_v48, %v1212_v44  ;;  %v569_v51 = vadd.f32 %v568_v49, %v1214_v45  ;;  %v409_v52 = vpop.f32.mrb[1].mxu1  ;;  %v570_v53 = vpop.f32.mrb[17].mxu0 }
 0x1b6   :  { %v410_v54 = vadd.f32 %v409_v52, %v1216_v46  ;;  %v571_v55 = vadd.f32 %v570_v53, %v1218_v47 }
 0x1b7   :  { %663 = vst [vmem:[%s1481_s5] sm:$0xff] %v408_v50  ;;  %665 = vst [vmem:[%s1481_s5 + $0x10] sm:$0xff] %v569_v51 }
 0x1b8   :  { %664 = vst [vmem:[%s1481_s5 + $0x8] sm:$0xff] %v410_v54  ;;  %666 = vst [vmem:[%s1481_s5 + $0x18] sm:$0xff] %v571_v55  ;;  %v413_v56 = vpop.f32.mrb[2].mxu1  ;;  %v574_v57 = vpop.f32.mrb[18].mxu0 }
 0x1b9   :  { %v414_v58 = vadd.f32 %v413_v56, %v1212_v44  ;;  %v575_v59 = vadd.f32 %v574_v57, %v1214_v45  ;;  %v415_v60 = vpop.f32.mrb[3].mxu1  ;;  %v576_v61 = vpop.f32.mrb[19].mxu0 }
 0x1ba   :  { %v416_v62 = vadd.f32 %v415_v60, %v1216_v46  ;;  %v577_v63 = vadd.f32 %v576_v61, %v1218_v47 }
 0x1bb   :  { %667 = vst [vmem:[%s1481_s5 + $0x20] sm:$0xff] %v414_v58  ;;  %669 = vst [vmem:[%s1481_s5 + $0x30] sm:$0xff] %v575_v59 }
 0x1bc   :  { %668 = vst [vmem:[%s1481_s5 + $0x28] sm:$0xff] %v416_v62  ;;  %670 = vst [vmem:[%s1481_s5 + $0x38] sm:$0xff] %v577_v63  ;;  %v419_v0 = vpop.f32.mrb[4].mxu1  ;;  %v580_v1 = vpop.f32.mrb[20].mxu0 }
 0x1bd   :  { %v420_v2 = vadd.f32 %v419_v0, %v1212_v44  ;;  %v581_v3 = vadd.f32 %v580_v1, %v1214_v45  ;;  %v421_v4 = vpop.f32.mrb[5].mxu1  ;;  %v582_v5 = vpop.f32.mrb[21].mxu0 }
 0x1be   :  { %v422_v6 = vadd.f32 %v421_v4, %v1216_v46  ;;  %v583_v7 = vadd.f32 %v582_v5, %v1218_v47 }
 0x1bf   :  { %671 = vst [vmem:[%s1481_s5 + $0x40] sm:$0xff] %v420_v2  ;;  %673 = vst [vmem:[%s1481_s5 + $0x50] sm:$0xff] %v581_v3 }
 0x1c0   :  { %672 = vst [vmem:[%s1481_s5 + $0x48] sm:$0xff] %v422_v6  ;;  %674 = vst [vmem:[%s1481_s5 + $0x58] sm:$0xff] %v583_v7  ;;  %v425_v8 = vpop.f32.mrb[6].mxu1  ;;  %v586_v9 = vpop.f32.mrb[22].mxu0 }
 0x1c1   :  { %v426_v10 = vadd.f32 %v425_v8, %v1212_v44  ;;  %v587_v11 = vadd.f32 %v586_v9, %v1214_v45  ;;  %v427_v12 = vpop.f32.mrb[7].mxu1  ;;  %v588_v13 = vpop.f32.mrb[23].mxu0 }
 0x1c2   :  { %v428_v14 = vadd.f32 %v427_v12, %v1216_v46  ;;  %v589_v15 = vadd.f32 %v588_v13, %v1218_v47 }
 0x1c3   :  { %675 = vst [vmem:[%s1481_s5 + $0x60] sm:$0xff] %v426_v10  ;;  %677 = vst [vmem:[%s1481_s5 + $0x70] sm:$0xff] %v587_v11 }
 0x1c4   :  { %676 = vst [vmem:[%s1481_s5 + $0x68] sm:$0xff] %v428_v14  ;;  %678 = vst [vmem:[%s1481_s5 + $0x78] sm:$0xff] %v589_v15  ;;  %v431_v16 = vpop.f32.mrb[8].mxu1  ;;  %v592_v17 = vpop.f32.mrb[24].mxu0 }
 0x1c5   :  { %v432_v18 = vadd.f32 %v431_v16, %v1212_v44  ;;  %v593_v19 = vadd.f32 %v592_v17, %v1214_v45  ;;  %v433_v20 = vpop.f32.mrb[9].mxu1  ;;  %v594_v21 = vpop.f32.mrb[25].mxu0 }
 0x1c6   :  { %v434_v22 = vadd.f32 %v433_v20, %v1216_v46  ;;  %v595_v23 = vadd.f32 %v594_v21, %v1218_v47 }
 0x1c7   :  { %679 = vst [vmem:[%s1481_s5 + $0x80] sm:$0xff] %v432_v18  ;;  %681 = vst [vmem:[%s1481_s5 + $0x90] sm:$0xff] %v593_v19 }
 0x1c8   :  { %680 = vst [vmem:[%s1481_s5 + $0x88] sm:$0xff] %v434_v22  ;;  %682 = vst [vmem:[%s1481_s5 + $0x98] sm:$0xff] %v595_v23  ;;  %v437_v24 = vpop.f32.mrb[10].mxu1  ;;  %v598_v25 = vpop.f32.mrb[26].mxu0 }
 0x1c9   :  { %v438_v26 = vadd.f32 %v437_v24, %v1212_v44  ;;  %v599_v27 = vadd.f32 %v598_v25, %v1214_v45  ;;  %v439_v28 = vpop.f32.mrb[11].mxu1  ;;  %v600_v29 = vpop.f32.mrb[27].mxu0 }
 0x1ca   :  { %v440_v30 = vadd.f32 %v439_v28, %v1216_v46  ;;  %v601_v31 = vadd.f32 %v600_v29, %v1218_v47 }
 0x1cb   :  { %683 = vst [vmem:[%s1481_s5 + $0xa0] sm:$0xff] %v438_v26  ;;  %685 = vst [vmem:[%s1481_s5 + $0xb0] sm:$0xff] %v599_v27 }
 0x1cc   :  { %684 = vst [vmem:[%s1481_s5 + $0xa8] sm:$0xff] %v440_v30  ;;  %686 = vst [vmem:[%s1481_s5 + $0xb8] sm:$0xff] %v601_v31  ;;  %v443_v32 = vpop.f32.mrb[12].mxu1  ;;  %v604_v33 = vpop.f32.mrb[28].mxu0 }
 0x1cd   :  { %v444_v34 = vadd.f32 %v443_v32, %v1212_v44  ;;  %v605_v35 = vadd.f32 %v604_v33, %v1214_v45  ;;  %v445_v36 = vpop.f32.mrb[13].mxu1  ;;  %v606_v37 = vpop.f32.mrb[29].mxu0 }
 0x1ce   :  { %v446_v38 = vadd.f32 %v445_v36, %v1216_v46  ;;  %v607_v39 = vadd.f32 %v606_v37, %v1218_v47 }
 0x1cf   :  { %687 = vst [vmem:[%s1481_s5 + $0xc0] sm:$0xff] %v444_v34  ;;  %689 = vst [vmem:[%s1481_s5 + $0xd0] sm:$0xff] %v605_v35 }
 0x1d0   :  { %688 = vst [vmem:[%s1481_s5 + $0xc8] sm:$0xff] %v446_v38  ;;  %690 = vst [vmem:[%s1481_s5 + $0xd8] sm:$0xff] %v607_v39  ;;  %v449_v40 = vpop.f32.mrb[14].mxu1  ;;  %v610_v41 = vpop.f32.mrb[30].mxu0 }
 0x1d1   :  { %v450_v42 = vadd.f32 %v449_v40, %v1212_v44  ;;  %v611_v43 = vadd.f32 %v610_v41, %v1214_v45  ;;  %v451_v48 = vpop.f32.mrb[15].mxu1  ;;  %v612_v49 = vpop.f32.mrb[31].mxu0 }
 0x1d2   :  { %v452_v50 = vadd.f32 %v451_v48, %v1216_v46  ;;  %v613_v51 = vadd.f32 %v612_v49, %v1218_v47 }
 0x1d3   :  { %691 = vst [vmem:[%s1481_s5 + $0xe0] sm:$0xff] %v450_v42  ;;  %693 = vst [vmem:[%s1481_s5 + $0xf0] sm:$0xff] %v611_v43 }
 0x1d4   :  { %692 = vst [vmem:[%s1481_s5 + $0xe8] sm:$0xff] %v452_v50  ;;  %694 = vst [vmem:[%s1481_s5 + $0xf8] sm:$0xff] %v613_v51  ;;  %v455_v52 = vpop.f32.mrb[16].mxu1  ;;  %v616_v53 = vpop.f32.mrb[32].mxu0 }
 0x1d5   :  { %v456_v54 = vadd.f32 %v455_v52, %v1212_v44  ;;  %v617_v55 = vadd.f32 %v616_v53, %v1214_v45  ;;  %v457_v56 = vpop.f32.mrb[17].mxu1  ;;  %v618_v57 = vpop.f32.mrb[33].mxu0 }
 0x1d6   :  { %v458_v58 = vadd.f32 %v457_v56, %v1216_v46  ;;  %v619_v59 = vadd.f32 %v618_v57, %v1218_v47 }
 0x1d7   :  { %695 = vst [vmem:[%s1481_s5 + $0x100] sm:$0xff] %v456_v54  ;;  %697 = vst [vmem:[%s1481_s5 + $0x110] sm:$0xff] %v617_v55 }
 0x1d8   :  { %696 = vst [vmem:[%s1481_s5 + $0x108] sm:$0xff] %v458_v58  ;;  %698 = vst [vmem:[%s1481_s5 + $0x118] sm:$0xff] %v619_v59  ;;  %v461_v60 = vpop.f32.mrb[18].mxu1  ;;  %v622_v61 = vpop.f32.mrb[34].mxu0 }
 0x1d9   :  { %v462_v62 = vadd.f32 %v461_v60, %v1212_v44  ;;  %v623_v63 = vadd.f32 %v622_v61, %v1214_v45  ;;  %v463_v0 = vpop.f32.mrb[19].mxu1  ;;  %v624_v1 = vpop.f32.mrb[35].mxu0 }
 0x1da   :  { %v464_v2 = vadd.f32 %v463_v0, %v1216_v46  ;;  %v625_v3 = vadd.f32 %v624_v1, %v1218_v47 }
 0x1db   :  { %699 = vst [vmem:[%s1481_s5 + $0x120] sm:$0xff] %v462_v62  ;;  %701 = vst [vmem:[%s1481_s5 + $0x130] sm:$0xff] %v623_v63 }
 0x1dc   :  { %700 = vst [vmem:[%s1481_s5 + $0x128] sm:$0xff] %v464_v2  ;;  %702 = vst [vmem:[%s1481_s5 + $0x138] sm:$0xff] %v625_v3  ;;  %v467_v4 = vpop.f32.mrb[20].mxu1  ;;  %v628_v5 = vpop.f32.mrb[36].mxu0 }
 0x1dd   :  { %v468_v6 = vadd.f32 %v467_v4, %v1212_v44  ;;  %v629_v7 = vadd.f32 %v628_v5, %v1214_v45  ;;  %v469_v8 = vpop.f32.mrb[21].mxu1  ;;  %v630_v9 = vpop.f32.mrb[37].mxu0 }
 0x1de   :  { %v470_v10 = vadd.f32 %v469_v8, %v1216_v46  ;;  %v631_v11 = vadd.f32 %v630_v9, %v1218_v47 }
 0x1df   :  { %703 = vst [vmem:[%s1481_s5 + $0x140] sm:$0xff] %v468_v6  ;;  %705 = vst [vmem:[%s1481_s5 + $0x150] sm:$0xff] %v629_v7 }
 0x1e0   :  { %704 = vst [vmem:[%s1481_s5 + $0x148] sm:$0xff] %v470_v10  ;;  %706 = vst [vmem:[%s1481_s5 + $0x158] sm:$0xff] %v631_v11  ;;  %v473_v12 = vpop.f32.mrb[22].mxu1  ;;  %v634_v13 = vpop.f32.mrb[38].mxu0 }
 0x1e1   :  { %v474_v14 = vadd.f32 %v473_v12, %v1212_v44  ;;  %v635_v15 = vadd.f32 %v634_v13, %v1214_v45  ;;  %v475_v16 = vpop.f32.mrb[23].mxu1  ;;  %v636_v17 = vpop.f32.mrb[39].mxu0 }
 0x1e2   :  { %v476_v18 = vadd.f32 %v475_v16, %v1216_v46  ;;  %v637_v19 = vadd.f32 %v636_v17, %v1218_v47 }
 0x1e3   :  { %707 = vst [vmem:[%s1481_s5 + $0x160] sm:$0xff] %v474_v14  ;;  %709 = vst [vmem:[%s1481_s5 + $0x170] sm:$0xff] %v635_v15 }
 0x1e4   :  { %708 = vst [vmem:[%s1481_s5 + $0x168] sm:$0xff] %v476_v18  ;;  %710 = vst [vmem:[%s1481_s5 + $0x178] sm:$0xff] %v637_v19  ;;  %v479_v20 = vpop.f32.mrb[24].mxu1  ;;  %v640_v21 = vpop.f32.mrb[40].mxu0 }
 0x1e5   :  { %v480_v22 = vadd.f32 %v479_v20, %v1212_v44  ;;  %v641_v23 = vadd.f32 %v640_v21, %v1214_v45  ;;  %v481_v24 = vpop.f32.mrb[25].mxu1  ;;  %v642_v25 = vpop.f32.mrb[41].mxu0 }
 0x1e6   :  { %v482_v26 = vadd.f32 %v481_v24, %v1216_v46  ;;  %v643_v27 = vadd.f32 %v642_v25, %v1218_v47 }
 0x1e7   :  { %711 = vst [vmem:[%s1481_s5 + $0x180] sm:$0xff] %v480_v22  ;;  %713 = vst [vmem:[%s1481_s5 + $0x190] sm:$0xff] %v641_v23 }
 0x1e8   :  { %712 = vst [vmem:[%s1481_s5 + $0x188] sm:$0xff] %v482_v26  ;;  %714 = vst [vmem:[%s1481_s5 + $0x198] sm:$0xff] %v643_v27  ;;  %v485_v28 = vpop.f32.mrb[26].mxu1  ;;  %v646_v29 = vpop.f32.mrb[42].mxu0 }
 0x1e9   :  { %v486_v30 = vadd.f32 %v485_v28, %v1212_v44  ;;  %v647_v31 = vadd.f32 %v646_v29, %v1214_v45  ;;  %v487_v32 = vpop.f32.mrb[27].mxu1  ;;  %v648_v33 = vpop.f32.mrb[43].mxu0 }
 0x1ea   :  { %v488_v34 = vadd.f32 %v487_v32, %v1216_v46  ;;  %v649_v35 = vadd.f32 %v648_v33, %v1218_v47 }
 0x1eb   :  { %715 = vst [vmem:[%s1481_s5 + $0x1a0] sm:$0xff] %v486_v30  ;;  %717 = vst [vmem:[%s1481_s5 + $0x1b0] sm:$0xff] %v647_v31 }
 0x1ec   :  { %716 = vst [vmem:[%s1481_s5 + $0x1a8] sm:$0xff] %v488_v34  ;;  %718 = vst [vmem:[%s1481_s5 + $0x1b8] sm:$0xff] %v649_v35  ;;  %v491_v36 = vpop.f32.mrb[28].mxu1  ;;  %v652_v37 = vpop.f32.mrb[44].mxu0 }
 0x1ed   :  { %v492_v38 = vadd.f32 %v491_v36, %v1212_v44  ;;  %v653_v39 = vadd.f32 %v652_v37, %v1214_v45  ;;  %v493_v40 = vpop.f32.mrb[29].mxu1  ;;  %v654_v41 = vpop.f32.mrb[45].mxu0 }
 0x1ee   :  { %v494_v42 = vadd.f32 %v493_v40, %v1216_v46  ;;  %v655_v43 = vadd.f32 %v654_v41, %v1218_v47 }
 0x1ef   :  { %719 = vst [vmem:[%s1481_s5 + $0x1c0] sm:$0xff] %v492_v38  ;;  %721 = vst [vmem:[%s1481_s5 + $0x1d0] sm:$0xff] %v653_v39 }
 0x1f0   :  { %720 = vst [vmem:[%s1481_s5 + $0x1c8] sm:$0xff] %v494_v42  ;;  %722 = vst [vmem:[%s1481_s5 + $0x1d8] sm:$0xff] %v655_v43  ;;  %v497_v48 = vpop.f32.mrb[30].mxu1  ;;  %v658_v49 = vpop.f32.mrb[46].mxu0 }
 0x1f1   :  { %v498_v50 = vadd.f32 %v497_v48, %v1212_v44  ;;  %v659_v51 = vadd.f32 %v658_v49, %v1214_v45  ;;  %v499_v52 = vpop.f32.mrb[31].mxu1  ;;  %v660_v53 = vpop.f32.mrb[47].mxu0 }
 0x1f2   :  { %v500_v54 = vadd.f32 %v499_v52, %v1216_v46  ;;  %v661_v55 = vadd.f32 %v660_v53, %v1218_v47 }
 0x1f3   :  { %723 = vst [vmem:[%s1481_s5 + $0x1e0] sm:$0xff] %v498_v50  ;;  %725 = vst [vmem:[%s1481_s5 + $0x1f0] sm:$0xff] %v659_v51 }
 0x1f4   :  { %724 = vst [vmem:[%s1481_s5 + $0x1e8] sm:$0xff] %v500_v54  ;;  %726 = vst [vmem:[%s1481_s5 + $0x1f8] sm:$0xff] %v661_v55 }

</bundles_post_ra>
